<compile_context>
chip_gen: v6e
topology: v6e:2x2x1
jax: 0.10.0
libtpu: 0.0.40
codegen_flags: <defaults>
</compile_context>

<pallas_src>
import numpy as np

import jax
import jax.numpy as jnp
from jax.experimental import pallas as pl
from jax.experimental.pallas import tpu as pltpu


# ---------------------------------------------------------------------------
# Fused kernel
# ---------------------------------------------------------------------------
def _mxu(a, b):
    """bf16 MXU matmul with f32 accumulation."""
    return jnp.dot(a.astype(jnp.bfloat16), b.astype(jnp.bfloat16),
                   preferred_element_type=jnp.float32)


def _lenet_fused_kernel(x_ref, b1w_ref, b1b_ref, r1_ref, c1_ref,
                        b2w_ref, b2b_ref, r2_ref, c2_ref,
                        f1w_ref, f1b_ref, f2w_ref, f2b_ref, f3w_ref, f3b_ref,
                        out_ref):
    # ---- conv1 (5x5, 1->6): 5 banded matmuls, cols = co*28 + ow -------------
    x = x_ref[0].astype(jnp.bfloat16)                       # (32, 32)
    acc1 = jnp.zeros((28, 6 * 28), jnp.float32)
    for kh in range(5):
        acc1 = acc1 + _mxu(x[kh:kh + 28, :], b1w_ref[kh])   # (28,32)@(32,168)
    y1 = jnp.maximum(acc1 + b1b_ref[...], 0.0)              # (28, 168)

    # ---- 2x2 max-pool fused (even/odd selection matmuls + max) --------------
    rows1 = jnp.maximum(_mxu(r1_ref[0], y1), _mxu(r1_ref[1], y1))      # (14, 168)
    p1 = jnp.maximum(_mxu(rows1, c1_ref[0]), _mxu(rows1, c1_ref[1]))   # (14, 84) cols = ci*14+ow

    # ---- conv2 (5x5, 6->16): 5 banded matmuls, cols = co*10 + ow ------------
    p1b = p1.astype(jnp.bfloat16)
    acc2 = jnp.zeros((10, 16 * 10), jnp.float32)
    for kh in range(5):
        acc2 = acc2 + _mxu(p1b[kh:kh + 10, :], b2w_ref[kh])  # (10,84)@(84,160)
    y2 = jnp.maximum(acc2 + b2b_ref[...], 0.0)               # (10, 160)

    # ---- 2x2 max-pool --------------------------------------------------------
    rows2 = jnp.maximum(_mxu(r2_ref[0], y2), _mxu(r2_ref[1], y2))      # (5, 160)
    p2 = jnp.maximum(_mxu(rows2, c2_ref[0]), _mxu(rows2, c2_ref[1]))   # (5, 80) cols = co*5+ow

    # ---- fc1 + ReLU (torch (C,H,W) flatten order folded into f1w layout) ----
    acc3 = jnp.zeros((1, 120), jnp.float32)
    for oh in range(5):
        acc3 = acc3 + _mxu(p2[oh:oh + 1, :], f1w_ref[oh])    # (1,80)@(80,120)
    h1 = jnp.maximum(acc3 + f1b_ref[...], 0.0)               # (1, 120)
    # dropout(0.5): identity in eval mode.  TODO(synk): training-mode dropout.

    # ---- fc2 + ReLU ----------------------------------------------------------
    h2 = jnp.maximum(_mxu(h1, f2w_ref[...]) + f2b_ref[...], 0.0)       # (1, 84)
    # dropout(0.5): identity in eval mode.

    # ---- fc3 + sigmoid (output padded to 128 lanes -> dense store) ----------
    logit = _mxu(h2, f3w_ref[...]) + f3b_ref[...]                      # (1, 128)
    out_ref[0] = 1.0 / (1.0 + jnp.exp(-logit))


# ---------------------------------------------------------------------------
# One-time weight preparation (PyTorch layout -> kernel-ready arrays)
# ---------------------------------------------------------------------------
def _pool_selectors(h, w, c):
    """Even/odd selection matrices for fused 2x2 max-pool."""
    Re = np.zeros((2, h // 2, h), np.float32)
    i = np.arange(h // 2)
    Re[0, i, 2 * i] = 1.0
    Re[1, i, 2 * i + 1] = 1.0
    Ce = np.zeros((2, c * w, c * (w // 2)), np.float32)
    j = np.arange(w // 2)
    for cc in range(c):
        Ce[0, cc * w + 2 * j, cc * (w // 2) + j] = 1.0
        Ce[1, cc * w + 2 * j + 1, cc * (w // 2) + j] = 1.0
    return Re, Ce


def prepare_kernel_params(p):
    """Transform PyTorch-layout params once, outside the hot path."""
    f32, bf16 = np.float32, jnp.bfloat16
    w1 = np.asarray(p["conv1_w"], f32)      # (6, 1, 5, 5)  (cout, cin, kh, kw)
    b1 = np.asarray(p["conv1_b"], f32)
    w2 = np.asarray(p["conv2_w"], f32)      # (16, 6, 5, 5)
    b2 = np.asarray(p["conv2_b"], f32)

    # conv1 banded weights: B1[kh, j, co*28+ow] = w1[co, 0, kh, j-ow]
    B1 = np.zeros((5, 32, 6 * 28), f32)
    ow = np.arange(28)
    co = np.arange(6)
    for kh in range(5):
        for kw in range(5):
            B1[kh, kw + ow[None, :], co[:, None] * 28 + ow[None, :]] = \
                w1[:, 0, kh, kw][:, None]
    bias1 = np.repeat(b1, 28)[None, :]                                  # (1, 168)

    # conv2 banded weights: B2[kh, ci*14+j, co*10+ow] = w2[co, ci, kh, j-ow]
    B2 = np.zeros((5, 6 * 14, 16 * 10), f32)
    ow = np.arange(10)
    co = np.arange(16)
    for kh in range(5):
        for kw in range(5):
            for ci in range(6):
                B2[kh, ci * 14 + kw + ow[None, :], co[:, None] * 10 + ow[None, :]] = \
                    w2[:, ci, kh, kw][:, None]
    bias2 = np.repeat(b2, 10)[None, :]                                  # (1, 160)

    R1, C1 = _pool_selectors(28, 28, 6)     # (2,14,28), (2,168,84)
    R2, C2 = _pool_selectors(10, 10, 16)    # (2,5,10),  (2,160,80)

    # fc1: fold torch.flatten (C,H,W) order into the weight: Wf1[oh, co*5+ow, n]
    f1 = np.asarray(p["fc1_w"], f32).reshape(120, 16, 5, 5)             # (n, co, oh, ow)
    Wf1 = np.transpose(f1, (2, 1, 3, 0)).reshape(5, 80, 120)
    bf1 = np.asarray(p["fc1_b"], f32)[None, :]                          # (1, 120)

    Wf2 = np.asarray(p["fc2_w"], f32).T                                 # (120, 84)
    bf2 = np.asarray(p["fc2_b"], f32)[None, :]                          # (1, 84)

    # fc3: pad the single output unit to 128 lanes for a lane-dense final store.
    Wf3 = np.zeros((84, 128), f32)
    Wf3[:, 0] = np.asarray(p["fc3_w"], f32)[0]
    bf3 = np.zeros((1, 128), f32)
    bf3[0, 0] = np.asarray(p["fc3_b"], f32)[0]

    return {
        "b1w": jnp.asarray(B1, bf16),  "b1b": jnp.asarray(bias1),
        "r1":  jnp.asarray(R1, bf16),  "c1":  jnp.asarray(C1, bf16),
        "b2w": jnp.asarray(B2, bf16),  "b2b": jnp.asarray(bias2),
        "r2":  jnp.asarray(R2, bf16),  "c2":  jnp.asarray(C2, bf16),
        "f1w": jnp.asarray(Wf1, bf16), "f1b": jnp.asarray(bf1),
        "f2w": jnp.asarray(Wf2, bf16), "f2b": jnp.asarray(bf2),
        "f3w": jnp.asarray(Wf3, bf16), "f3b": jnp.asarray(bf3),
    }


# ---------------------------------------------------------------------------
# Forward pass (single pallas_call)
# ---------------------------------------------------------------------------
_WEIGHT_ORDER = ("b1w", "b1b", "r1", "c1", "b2w", "b2b", "r2", "c2",
                 "f1w", "f1b", "f2w", "f2b", "f3w", "f3b")


def _const_spec(shape):
    nd = len(shape)
    return pl.BlockSpec(shape, lambda i: (0,) * nd)


@jax.jit
def net_forward(kp, x_nchw):
    n = x_nchw.shape[0]
    x = x_nchw.reshape(n, 32, 32).astype(jnp.float32)     # cin == 1

    weight_args = [kp[k] for k in _WEIGHT_ORDER]
    weight_specs = [_const_spec(kp[k].shape) for k in _WEIGHT_ORDER]

    out = pl.pallas_call(
        _lenet_fused_kernel,
        out_shape=jax.ShapeDtypeStruct((n, 1, 128), jnp.float32),
        grid=(n,),
        in_specs=[pl.BlockSpec((1, 32, 32), lambda i: (i, 0, 0))] + weight_specs,
        out_specs=pl.BlockSpec((1, 1, 128), lambda i: (i, 0, 0)),
        compiler_params=pltpu.CompilerParams(
            dimension_semantics=("parallel",),
            vmem_limit_bytes=32 * 1024 * 1024,
        ),
    )(x, *weight_args)
    return out[:, 0, :1]                                   # (N, 1)


# ---------------------------------------------------------------------------
# Synthetic PyTorch-layout parameters + pure-JAX reference
# ---------------------------------------------------------------------------
def init_params(key):
    ks = jax.random.split(key, 10)
    s = 0.1
    return {
        "conv1_w": jax.random.normal(ks[0], (6, 1, 5, 5), jnp.float32) * s,
        "conv1_b": jax.random.normal(ks[1], (6,), jnp.float32) * s,
        "conv2_w": jax.random.normal(ks[2], (16, 6, 5, 5), jnp.float32) * s,
        "conv2_b": jax.random.normal(ks[3], (16,), jnp.float32) * s,
        "fc1_w": jax.random.normal(ks[4], (120, 400), jnp.float32) * s,
        "fc1_b": jax.random.normal(ks[5], (120,), jnp.float32) * s,
        "fc2_w": jax.random.normal(ks[6], (84, 120), jnp.float32) * s,
        "fc2_b": jax.random.normal(ks[7], (84,), jnp.float32) * s,
        "fc3_w": jax.random.normal(ks[8], (1, 84), jnp.float32) * s,
        "fc3_b": jax.random.normal(ks[9], (1,), jnp.float32) * s,
    }


def reference_forward(p, x_nchw):
    """Plain-JAX f32 reference matching the PyTorch Net forward (eval mode)."""
    x = x_nchw.astype(jnp.float32)

    def conv_valid(a, w, b):
        n, cin, h, wid = a.shape
        cout, _, kh, kw = w.shape
        oh, ow = h - kh + 1, wid - kw + 1
        cols = [a[:, :, i:i + oh, j:j + ow] for i in range(kh) for j in range(kw)]
        pat = jnp.stack(cols, axis=2).reshape(n, cin * kh * kw, oh * ow)
        y = jnp.einsum("ok,nkp->nop", w.reshape(cout, cin * kh * kw), pat)
        return y.reshape(n, cout, oh, ow) + b[None, :, None, None]

    def pool2(a):
        n, c, h, w = a.shape
        return a.reshape(n, c, h // 2, 2, w // 2, 2).max(axis=(3, 5))

    a = pool2(jnp.maximum(conv_valid(x, p["conv1_w"], p["conv1_b"]), 0.0))
    a = pool2(jnp.maximum(conv_valid(a, p["conv2_w"], p["conv2_b"]), 0.0))
    a = a.reshape(a.shape[0], -1)                                   # (N, 400)
    a = jnp.maximum(a @ p["fc1_w"].T + p["fc1_b"], 0.0)
    a = jnp.maximum(a @ p["fc2_w"].T + p["fc2_b"], 0.0)
    return jax.nn.sigmoid(a @ p["fc3_w"].T + p["fc3_b"])


# ---------------------------------------------------------------------------
# Main
# ---------------------------------------------------------------------------
if __name__ == "__main__":
    key = jax.random.PRNGKey(0)
    pkey, xkey = jax.random.split(key)
    params = init_params(pkey)
    kparams = prepare_kernel_params(params)

    # LeNet geometry requires 32x32 inputs so that fc1 sees 16*5*5 features.
    x = jax.random.normal(xkey, (2, 1, 32, 32), jnp.float32)   # NCHW

    out = jax.block_until_ready(net_forward(kparams, x))
    assert out.shape == (2, 1), out.shape
    assert bool(jnp.all((out >= 0.0) & (out <= 1.0)))

    ref = jax.block_until_ready(reference_forward(params, x))
    max_err = float(jnp.max(jnp.abs(out - ref)))
    assert max_err < 5e-2, f"kernel vs reference max abs err {max_err}"

    print("KERNEL_OK")
</pallas_src>

<mosaic_0001>
module attributes {stable_mosaic.version = 11 : i64} {
  func.func @_lenet_fused_kernel(%arg0: i32, %arg1: memref<1x32x32xf32, #tpu.memory_space<vmem>>, %arg2: memref<5x32x168xbf16, #tpu.memory_space<vmem>>, %arg3: memref<1x168xf32, #tpu.memory_space<vmem>>, %arg4: memref<2x14x28xbf16, #tpu.memory_space<vmem>>, %arg5: memref<2x168x84xbf16, #tpu.memory_space<vmem>>, %arg6: memref<5x84x160xbf16, #tpu.memory_space<vmem>>, %arg7: memref<1x160xf32, #tpu.memory_space<vmem>>, %arg8: memref<2x5x10xbf16, #tpu.memory_space<vmem>>, %arg9: memref<2x160x80xbf16, #tpu.memory_space<vmem>>, %arg10: memref<5x80x120xbf16, #tpu.memory_space<vmem>>, %arg11: memref<1x120xf32, #tpu.memory_space<vmem>>, %arg12: memref<120x84xbf16, #tpu.memory_space<vmem>>, %arg13: memref<1x84xf32, #tpu.memory_space<vmem>>, %arg14: memref<84x128xbf16, #tpu.memory_space<vmem>>, %arg15: memref<1x128xf32, #tpu.memory_space<vmem>>, %arg16: memref<1x1x128xf32, #tpu.memory_space<vmem>>) attributes {dimension_semantics = [#tpu.dimension_semantics<parallel>], iteration_bounds = array<i64: 2>, scalar_prefetch = 0 : i64, scratch_operands = 0 : i64, tpu.core_type = #tpu.core_type<tc>, window_params = [{transform_indices = @transform_0, window_bounds = array<i64: 1, 32, 32>}, {pipeline_mode = #tpu.pipeline_mode<synchronous>, transform_indices = @transform_1, window_bounds = array<i64: 5, 32, 168>}, {pipeline_mode = #tpu.pipeline_mode<synchronous>, transform_indices = @transform_2, window_bounds = array<i64: 1, 168>}, {pipeline_mode = #tpu.pipeline_mode<synchronous>, transform_indices = @transform_3, window_bounds = array<i64: 2, 14, 28>}, {pipeline_mode = #tpu.pipeline_mode<synchronous>, transform_indices = @transform_4, window_bounds = array<i64: 2, 168, 84>}, {pipeline_mode = #tpu.pipeline_mode<synchronous>, transform_indices = @transform_5, window_bounds = array<i64: 5, 84, 160>}, {pipeline_mode = #tpu.pipeline_mode<synchronous>, transform_indices = @transform_6, window_bounds = array<i64: 1, 160>}, {pipeline_mode = #tpu.pipeline_mode<synchronous>, transform_indices = @transform_7, window_bounds = array<i64: 2, 5, 10>}, {pipeline_mode = #tpu.pipeline_mode<synchronous>, transform_indices = @transform_8, window_bounds = array<i64: 2, 160, 80>}, {pipeline_mode = #tpu.pipeline_mode<synchronous>, transform_indices = @transform_9, window_bounds = array<i64: 5, 80, 120>}, {pipeline_mode = #tpu.pipeline_mode<synchronous>, transform_indices = @transform_10, window_bounds = array<i64: 1, 120>}, {pipeline_mode = #tpu.pipeline_mode<synchronous>, transform_indices = @transform_11, window_bounds = array<i64: 120, 84>}, {pipeline_mode = #tpu.pipeline_mode<synchronous>, transform_indices = @transform_12, window_bounds = array<i64: 1, 84>}, {pipeline_mode = #tpu.pipeline_mode<synchronous>, transform_indices = @transform_13, window_bounds = array<i64: 84, 128>}, {pipeline_mode = #tpu.pipeline_mode<synchronous>, transform_indices = @transform_14, window_bounds = array<i64: 1, 128>}, {transform_indices = @transform_15, window_bounds = array<i64: 1, 1, 128>}]} {
    %c0 = arith.constant 0 : index
    %c0_0 = arith.constant 0 : index
    %c0_1 = arith.constant 0 : index
    %0 = vector.load %arg1[%c0, %c0_0, %c0_1] : memref<1x32x32xf32, #tpu.memory_space<vmem>>, vector<1x32x32xf32>
    %1 = vector.shape_cast %0 : vector<1x32x32xf32> to vector<32x32xf32>
    %2 = arith.truncf %1 : vector<32x32xf32> to vector<32x32xbf16>
    %cst = arith.constant 0.000000e+00 : f32
    %3 = vector.broadcast %cst : f32 to vector<28x168xf32>
    %4 = vector.extract_strided_slice %2 {offsets = [0, 0], sizes = [28, 32], strides = [1, 1]} : vector<32x32xbf16> to vector<28x32xbf16>
    %c0_2 = arith.constant 0 : index
    %c0_3 = arith.constant 0 : index
    %c0_4 = arith.constant 0 : index
    %5 = vector.load %arg2[%c0_2, %c0_3, %c0_4] : memref<5x32x168xbf16, #tpu.memory_space<vmem>>, vector<1x32x168xbf16>
    %6 = vector.shape_cast %5 : vector<1x32x168xbf16> to vector<32x168xbf16>
    %cst_5 = arith.constant dense<0.000000e+00> : vector<28x168xf32>
    %7 = tpu.matmul %4, %6, %cst_5 {dimension_numbers = #tpu.dot_dimension_numbers<[1], [0], [0], [1], [0, 0, 1, 1], [], []>} : vector<28x32xbf16>, vector<32x168xbf16>, vector<28x168xf32> -> vector<28x168xf32>
    %8 = arith.addf %3, %7 : vector<28x168xf32>
    %9 = vector.extract_strided_slice %2 {offsets = [1, 0], sizes = [28, 32], strides = [1, 1]} : vector<32x32xbf16> to vector<28x32xbf16>
    %c1 = arith.constant 1 : index
    %c0_6 = arith.constant 0 : index
    %c0_7 = arith.constant 0 : index
    %10 = vector.load %arg2[%c1, %c0_6, %c0_7] : memref<5x32x168xbf16, #tpu.memory_space<vmem>>, vector<1x32x168xbf16>
    %11 = vector.shape_cast %10 : vector<1x32x168xbf16> to vector<32x168xbf16>
    %cst_8 = arith.constant dense<0.000000e+00> : vector<28x168xf32>
    %12 = tpu.matmul %9, %11, %cst_8 {dimension_numbers = #tpu.dot_dimension_numbers<[1], [0], [0], [1], [0, 0, 1, 1], [], []>} : vector<28x32xbf16>, vector<32x168xbf16>, vector<28x168xf32> -> vector<28x168xf32>
    %13 = arith.addf %8, %12 : vector<28x168xf32>
    %14 = vector.extract_strided_slice %2 {offsets = [2, 0], sizes = [28, 32], strides = [1, 1]} : vector<32x32xbf16> to vector<28x32xbf16>
    %c2 = arith.constant 2 : index
    %c0_9 = arith.constant 0 : index
    %c0_10 = arith.constant 0 : index
    %15 = vector.load %arg2[%c2, %c0_9, %c0_10] : memref<5x32x168xbf16, #tpu.memory_space<vmem>>, vector<1x32x168xbf16>
    %16 = vector.shape_cast %15 : vector<1x32x168xbf16> to vector<32x168xbf16>
    %cst_11 = arith.constant dense<0.000000e+00> : vector<28x168xf32>
    %17 = tpu.matmul %14, %16, %cst_11 {dimension_numbers = #tpu.dot_dimension_numbers<[1], [0], [0], [1], [0, 0, 1, 1], [], []>} : vector<28x32xbf16>, vector<32x168xbf16>, vector<28x168xf32> -> vector<28x168xf32>
    %18 = arith.addf %13, %17 : vector<28x168xf32>
    %19 = vector.extract_strided_slice %2 {offsets = [3, 0], sizes = [28, 32], strides = [1, 1]} : vector<32x32xbf16> to vector<28x32xbf16>
    %c3 = arith.constant 3 : index
    %c0_12 = arith.constant 0 : index
    %c0_13 = arith.constant 0 : index
    %20 = vector.load %arg2[%c3, %c0_12, %c0_13] : memref<5x32x168xbf16, #tpu.memory_space<vmem>>, vector<1x32x168xbf16>
    %21 = vector.shape_cast %20 : vector<1x32x168xbf16> to vector<32x168xbf16>
    %cst_14 = arith.constant dense<0.000000e+00> : vector<28x168xf32>
    %22 = tpu.matmul %19, %21, %cst_14 {dimension_numbers = #tpu.dot_dimension_numbers<[1], [0], [0], [1], [0, 0, 1, 1], [], []>} : vector<28x32xbf16>, vector<32x168xbf16>, vector<28x168xf32> -> vector<28x168xf32>
    %23 = arith.addf %18, %22 : vector<28x168xf32>
    %24 = vector.extract_strided_slice %2 {offsets = [4, 0], sizes = [28, 32], strides = [1, 1]} : vector<32x32xbf16> to vector<28x32xbf16>
    %c4 = arith.constant 4 : index
    %c0_15 = arith.constant 0 : index
    %c0_16 = arith.constant 0 : index
    %25 = vector.load %arg2[%c4, %c0_15, %c0_16] : memref<5x32x168xbf16, #tpu.memory_space<vmem>>, vector<1x32x168xbf16>
    %26 = vector.shape_cast %25 : vector<1x32x168xbf16> to vector<32x168xbf16>
    %cst_17 = arith.constant dense<0.000000e+00> : vector<28x168xf32>
    %27 = tpu.matmul %24, %26, %cst_17 {dimension_numbers = #tpu.dot_dimension_numbers<[1], [0], [0], [1], [0, 0, 1, 1], [], []>} : vector<28x32xbf16>, vector<32x168xbf16>, vector<28x168xf32> -> vector<28x168xf32>
    %28 = arith.addf %23, %27 : vector<28x168xf32>
    %c0_18 = arith.constant 0 : index
    %c0_19 = arith.constant 0 : index
    %29 = vector.load %arg3[%c0_18, %c0_19] : memref<1x168xf32, #tpu.memory_space<vmem>>, vector<1x168xf32>
    %30 = vector.broadcast %29 : vector<1x168xf32> to vector<28x168xf32>
    %31 = arith.addf %28, %30 : vector<28x168xf32>
    %cst_20 = arith.constant 0.000000e+00 : f32
    %32 = vector.broadcast %cst_20 : f32 to vector<28x168xf32>
    %33 = arith.maximumf %31, %32 : vector<28x168xf32>
    %c0_21 = arith.constant 0 : index
    %c0_22 = arith.constant 0 : index
    %c0_23 = arith.constant 0 : index
    %34 = vector.load %arg4[%c0_21, %c0_22, %c0_23] : memref<2x14x28xbf16, #tpu.memory_space<vmem>>, vector<1x14x28xbf16>
    %35 = vector.shape_cast %34 : vector<1x14x28xbf16> to vector<14x28xbf16>
    %36 = arith.truncf %33 : vector<28x168xf32> to vector<28x168xbf16>
    %cst_24 = arith.constant dense<0.000000e+00> : vector<14x168xf32>
    %37 = tpu.matmul %35, %36, %cst_24 {dimension_numbers = #tpu.dot_dimension_numbers<[1], [0], [0], [1], [0, 0, 1, 1], [], []>} : vector<14x28xbf16>, vector<28x168xbf16>, vector<14x168xf32> -> vector<14x168xf32>
    %c1_25 = arith.constant 1 : index
    %c0_26 = arith.constant 0 : index
    %c0_27 = arith.constant 0 : index
    %38 = vector.load %arg4[%c1_25, %c0_26, %c0_27] : memref<2x14x28xbf16, #tpu.memory_space<vmem>>, vector<1x14x28xbf16>
    %39 = vector.shape_cast %38 : vector<1x14x28xbf16> to vector<14x28xbf16>
    %40 = arith.truncf %33 : vector<28x168xf32> to vector<28x168xbf16>
    %cst_28 = arith.constant dense<0.000000e+00> : vector<14x168xf32>
    %41 = tpu.matmul %39, %40, %cst_28 {dimension_numbers = #tpu.dot_dimension_numbers<[1], [0], [0], [1], [0, 0, 1, 1], [], []>} : vector<14x28xbf16>, vector<28x168xbf16>, vector<14x168xf32> -> vector<14x168xf32>
    %42 = arith.maximumf %37, %41 : vector<14x168xf32>
    %c0_29 = arith.constant 0 : index
    %c0_30 = arith.constant 0 : index
    %c0_31 = arith.constant 0 : index
    %43 = vector.load %arg5[%c0_29, %c0_30, %c0_31] : memref<2x168x84xbf16, #tpu.memory_space<vmem>>, vector<1x168x84xbf16>
    %44 = vector.shape_cast %43 : vector<1x168x84xbf16> to vector<168x84xbf16>
    %45 = arith.truncf %42 : vector<14x168xf32> to vector<14x168xbf16>
    %cst_32 = arith.constant dense<0.000000e+00> : vector<14x84xf32>
    %46 = tpu.matmul %45, %44, %cst_32 {dimension_numbers = #tpu.dot_dimension_numbers<[1], [0], [0], [1], [0, 0, 1, 1], [], []>} : vector<14x168xbf16>, vector<168x84xbf16>, vector<14x84xf32> -> vector<14x84xf32>
    %c1_33 = arith.constant 1 : index
    %c0_34 = arith.constant 0 : index
    %c0_35 = arith.constant 0 : index
    %47 = vector.load %arg5[%c1_33, %c0_34, %c0_35] : memref<2x168x84xbf16, #tpu.memory_space<vmem>>, vector<1x168x84xbf16>
    %48 = vector.shape_cast %47 : vector<1x168x84xbf16> to vector<168x84xbf16>
    %49 = arith.truncf %42 : vector<14x168xf32> to vector<14x168xbf16>
    %cst_36 = arith.constant dense<0.000000e+00> : vector<14x84xf32>
    %50 = tpu.matmul %49, %48, %cst_36 {dimension_numbers = #tpu.dot_dimension_numbers<[1], [0], [0], [1], [0, 0, 1, 1], [], []>} : vector<14x168xbf16>, vector<168x84xbf16>, vector<14x84xf32> -> vector<14x84xf32>
    %51 = arith.maximumf %46, %50 : vector<14x84xf32>
    %52 = arith.truncf %51 : vector<14x84xf32> to vector<14x84xbf16>
    %cst_37 = arith.constant 0.000000e+00 : f32
    %53 = vector.broadcast %cst_37 : f32 to vector<10x160xf32>
    %54 = vector.extract_strided_slice %52 {offsets = [0, 0], sizes = [10, 84], strides = [1, 1]} : vector<14x84xbf16> to vector<10x84xbf16>
    %c0_38 = arith.constant 0 : index
    %c0_39 = arith.constant 0 : index
    %c0_40 = arith.constant 0 : index
    %55 = vector.load %arg6[%c0_38, %c0_39, %c0_40] : memref<5x84x160xbf16, #tpu.memory_space<vmem>>, vector<1x84x160xbf16>
    %56 = vector.shape_cast %55 : vector<1x84x160xbf16> to vector<84x160xbf16>
    %cst_41 = arith.constant dense<0.000000e+00> : vector<10x160xf32>
    %57 = tpu.matmul %54, %56, %cst_41 {dimension_numbers = #tpu.dot_dimension_numbers<[1], [0], [0], [1], [0, 0, 1, 1], [], []>} : vector<10x84xbf16>, vector<84x160xbf16>, vector<10x160xf32> -> vector<10x160xf32>
    %58 = arith.addf %53, %57 : vector<10x160xf32>
    %59 = vector.extract_strided_slice %52 {offsets = [1, 0], sizes = [10, 84], strides = [1, 1]} : vector<14x84xbf16> to vector<10x84xbf16>
    %c1_42 = arith.constant 1 : index
    %c0_43 = arith.constant 0 : index
    %c0_44 = arith.constant 0 : index
    %60 = vector.load %arg6[%c1_42, %c0_43, %c0_44] : memref<5x84x160xbf16, #tpu.memory_space<vmem>>, vector<1x84x160xbf16>
    %61 = vector.shape_cast %60 : vector<1x84x160xbf16> to vector<84x160xbf16>
    %cst_45 = arith.constant dense<0.000000e+00> : vector<10x160xf32>
    %62 = tpu.matmul %59, %61, %cst_45 {dimension_numbers = #tpu.dot_dimension_numbers<[1], [0], [0], [1], [0, 0, 1, 1], [], []>} : vector<10x84xbf16>, vector<84x160xbf16>, vector<10x160xf32> -> vector<10x160xf32>
    %63 = arith.addf %58, %62 : vector<10x160xf32>
    %64 = vector.extract_strided_slice %52 {offsets = [2, 0], sizes = [10, 84], strides = [1, 1]} : vector<14x84xbf16> to vector<10x84xbf16>
    %c2_46 = arith.constant 2 : index
    %c0_47 = arith.constant 0 : index
    %c0_48 = arith.constant 0 : index
    %65 = vector.load %arg6[%c2_46, %c0_47, %c0_48] : memref<5x84x160xbf16, #tpu.memory_space<vmem>>, vector<1x84x160xbf16>
    %66 = vector.shape_cast %65 : vector<1x84x160xbf16> to vector<84x160xbf16>
    %cst_49 = arith.constant dense<0.000000e+00> : vector<10x160xf32>
    %67 = tpu.matmul %64, %66, %cst_49 {dimension_numbers = #tpu.dot_dimension_numbers<[1], [0], [0], [1], [0, 0, 1, 1], [], []>} : vector<10x84xbf16>, vector<84x160xbf16>, vector<10x160xf32> -> vector<10x160xf32>
    %68 = arith.addf %63, %67 : vector<10x160xf32>
    %69 = vector.extract_strided_slice %52 {offsets = [3, 0], sizes = [10, 84], strides = [1, 1]} : vector<14x84xbf16> to vector<10x84xbf16>
    %c3_50 = arith.constant 3 : index
    %c0_51 = arith.constant 0 : index
    %c0_52 = arith.constant 0 : index
    %70 = vector.load %arg6[%c3_50, %c0_51, %c0_52] : memref<5x84x160xbf16, #tpu.memory_space<vmem>>, vector<1x84x160xbf16>
    %71 = vector.shape_cast %70 : vector<1x84x160xbf16> to vector<84x160xbf16>
    %cst_53 = arith.constant dense<0.000000e+00> : vector<10x160xf32>
    %72 = tpu.matmul %69, %71, %cst_53 {dimension_numbers = #tpu.dot_dimension_numbers<[1], [0], [0], [1], [0, 0, 1, 1], [], []>} : vector<10x84xbf16>, vector<84x160xbf16>, vector<10x160xf32> -> vector<10x160xf32>
    %73 = arith.addf %68, %72 : vector<10x160xf32>
    %74 = vector.extract_strided_slice %52 {offsets = [4, 0], sizes = [10, 84], strides = [1, 1]} : vector<14x84xbf16> to vector<10x84xbf16>
    %c4_54 = arith.constant 4 : index
    %c0_55 = arith.constant 0 : index
    %c0_56 = arith.constant 0 : index
    %75 = vector.load %arg6[%c4_54, %c0_55, %c0_56] : memref<5x84x160xbf16, #tpu.memory_space<vmem>>, vector<1x84x160xbf16>
    %76 = vector.shape_cast %75 : vector<1x84x160xbf16> to vector<84x160xbf16>
    %cst_57 = arith.constant dense<0.000000e+00> : vector<10x160xf32>
    %77 = tpu.matmul %74, %76, %cst_57 {dimension_numbers = #tpu.dot_dimension_numbers<[1], [0], [0], [1], [0, 0, 1, 1], [], []>} : vector<10x84xbf16>, vector<84x160xbf16>, vector<10x160xf32> -> vector<10x160xf32>
    %78 = arith.addf %73, %77 : vector<10x160xf32>
    %c0_58 = arith.constant 0 : index
    %c0_59 = arith.constant 0 : index
    %79 = vector.load %arg7[%c0_58, %c0_59] : memref<1x160xf32, #tpu.memory_space<vmem>>, vector<1x160xf32>
    %80 = vector.broadcast %79 : vector<1x160xf32> to vector<10x160xf32>
    %81 = arith.addf %78, %80 : vector<10x160xf32>
    %cst_60 = arith.constant 0.000000e+00 : f32
    %82 = vector.broadcast %cst_60 : f32 to vector<10x160xf32>
    %83 = arith.maximumf %81, %82 : vector<10x160xf32>
    %c0_61 = arith.constant 0 : index
    %c0_62 = arith.constant 0 : index
    %c0_63 = arith.constant 0 : index
    %84 = vector.load %arg8[%c0_61, %c0_62, %c0_63] : memref<2x5x10xbf16, #tpu.memory_space<vmem>>, vector<1x5x10xbf16>
    %85 = vector.shape_cast %84 : vector<1x5x10xbf16> to vector<5x10xbf16>
    %86 = arith.truncf %83 : vector<10x160xf32> to vector<10x160xbf16>
    %cst_64 = arith.constant dense<0.000000e+00> : vector<5x160xf32>
    %87 = tpu.matmul %85, %86, %cst_64 {dimension_numbers = #tpu.dot_dimension_numbers<[1], [0], [0], [1], [0, 0, 1, 1], [], []>} : vector<5x10xbf16>, vector<10x160xbf16>, vector<5x160xf32> -> vector<5x160xf32>
    %c1_65 = arith.constant 1 : index
    %c0_66 = arith.constant 0 : index
    %c0_67 = arith.constant 0 : index
    %88 = vector.load %arg8[%c1_65, %c0_66, %c0_67] : memref<2x5x10xbf16, #tpu.memory_space<vmem>>, vector<1x5x10xbf16>
    %89 = vector.shape_cast %88 : vector<1x5x10xbf16> to vector<5x10xbf16>
    %90 = arith.truncf %83 : vector<10x160xf32> to vector<10x160xbf16>
    %cst_68 = arith.constant dense<0.000000e+00> : vector<5x160xf32>
    %91 = tpu.matmul %89, %90, %cst_68 {dimension_numbers = #tpu.dot_dimension_numbers<[1], [0], [0], [1], [0, 0, 1, 1], [], []>} : vector<5x10xbf16>, vector<10x160xbf16>, vector<5x160xf32> -> vector<5x160xf32>
    %92 = arith.maximumf %87, %91 : vector<5x160xf32>
    %c0_69 = arith.constant 0 : index
    %c0_70 = arith.constant 0 : index
    %c0_71 = arith.constant 0 : index
    %93 = vector.load %arg9[%c0_69, %c0_70, %c0_71] : memref<2x160x80xbf16, #tpu.memory_space<vmem>>, vector<1x160x80xbf16>
    %94 = vector.shape_cast %93 : vector<1x160x80xbf16> to vector<160x80xbf16>
    %95 = arith.truncf %92 : vector<5x160xf32> to vector<5x160xbf16>
    %cst_72 = arith.constant dense<0.000000e+00> : vector<5x80xf32>
    %96 = tpu.matmul %95, %94, %cst_72 {dimension_numbers = #tpu.dot_dimension_numbers<[1], [0], [0], [1], [0, 0, 1, 1], [], []>} : vector<5x160xbf16>, vector<160x80xbf16>, vector<5x80xf32> -> vector<5x80xf32>
    %c1_73 = arith.constant 1 : index
    %c0_74 = arith.constant 0 : index
    %c0_75 = arith.constant 0 : index
    %97 = vector.load %arg9[%c1_73, %c0_74, %c0_75] : memref<2x160x80xbf16, #tpu.memory_space<vmem>>, vector<1x160x80xbf16>
    %98 = vector.shape_cast %97 : vector<1x160x80xbf16> to vector<160x80xbf16>
    %99 = arith.truncf %92 : vector<5x160xf32> to vector<5x160xbf16>
    %cst_76 = arith.constant dense<0.000000e+00> : vector<5x80xf32>
    %100 = tpu.matmul %99, %98, %cst_76 {dimension_numbers = #tpu.dot_dimension_numbers<[1], [0], [0], [1], [0, 0, 1, 1], [], []>} : vector<5x160xbf16>, vector<160x80xbf16>, vector<5x80xf32> -> vector<5x80xf32>
    %101 = arith.maximumf %96, %100 : vector<5x80xf32>
    %cst_77 = arith.constant 0.000000e+00 : f32
    %102 = vector.broadcast %cst_77 : f32 to vector<1x120xf32>
    %103 = vector.extract_strided_slice %101 {offsets = [0, 0], sizes = [1, 80], strides = [1, 1]} : vector<5x80xf32> to vector<1x80xf32>
    %c0_78 = arith.constant 0 : index
    %c0_79 = arith.constant 0 : index
    %c0_80 = arith.constant 0 : index
    %104 = vector.load %arg10[%c0_78, %c0_79, %c0_80] : memref<5x80x120xbf16, #tpu.memory_space<vmem>>, vector<1x80x120xbf16>
    %105 = vector.shape_cast %104 : vector<1x80x120xbf16> to vector<80x120xbf16>
    %106 = arith.truncf %103 : vector<1x80xf32> to vector<1x80xbf16>
    %cst_81 = arith.constant dense<0.000000e+00> : vector<1x120xf32>
    %107 = tpu.matmul %106, %105, %cst_81 {dimension_numbers = #tpu.dot_dimension_numbers<[1], [0], [0], [1], [0, 0, 1, 1], [], []>} : vector<1x80xbf16>, vector<80x120xbf16>, vector<1x120xf32> -> vector<1x120xf32>
    %108 = arith.addf %102, %107 : vector<1x120xf32>
    %109 = vector.extract_strided_slice %101 {offsets = [1, 0], sizes = [1, 80], strides = [1, 1]} : vector<5x80xf32> to vector<1x80xf32>
    %c1_82 = arith.constant 1 : index
    %c0_83 = arith.constant 0 : index
    %c0_84 = arith.constant 0 : index
    %110 = vector.load %arg10[%c1_82, %c0_83, %c0_84] : memref<5x80x120xbf16, #tpu.memory_space<vmem>>, vector<1x80x120xbf16>
    %111 = vector.shape_cast %110 : vector<1x80x120xbf16> to vector<80x120xbf16>
    %112 = arith.truncf %109 : vector<1x80xf32> to vector<1x80xbf16>
    %cst_85 = arith.constant dense<0.000000e+00> : vector<1x120xf32>
    %113 = tpu.matmul %112, %111, %cst_85 {dimension_numbers = #tpu.dot_dimension_numbers<[1], [0], [0], [1], [0, 0, 1, 1], [], []>} : vector<1x80xbf16>, vector<80x120xbf16>, vector<1x120xf32> -> vector<1x120xf32>
    %114 = arith.addf %108, %113 : vector<1x120xf32>
    %115 = vector.extract_strided_slice %101 {offsets = [2, 0], sizes = [1, 80], strides = [1, 1]} : vector<5x80xf32> to vector<1x80xf32>
    %c2_86 = arith.constant 2 : index
    %c0_87 = arith.constant 0 : index
    %c0_88 = arith.constant 0 : index
    %116 = vector.load %arg10[%c2_86, %c0_87, %c0_88] : memref<5x80x120xbf16, #tpu.memory_space<vmem>>, vector<1x80x120xbf16>
    %117 = vector.shape_cast %116 : vector<1x80x120xbf16> to vector<80x120xbf16>
    %118 = arith.truncf %115 : vector<1x80xf32> to vector<1x80xbf16>
    %cst_89 = arith.constant dense<0.000000e+00> : vector<1x120xf32>
    %119 = tpu.matmul %118, %117, %cst_89 {dimension_numbers = #tpu.dot_dimension_numbers<[1], [0], [0], [1], [0, 0, 1, 1], [], []>} : vector<1x80xbf16>, vector<80x120xbf16>, vector<1x120xf32> -> vector<1x120xf32>
    %120 = arith.addf %114, %119 : vector<1x120xf32>
    %121 = vector.extract_strided_slice %101 {offsets = [3, 0], sizes = [1, 80], strides = [1, 1]} : vector<5x80xf32> to vector<1x80xf32>
    %c3_90 = arith.constant 3 : index
    %c0_91 = arith.constant 0 : index
    %c0_92 = arith.constant 0 : index
    %122 = vector.load %arg10[%c3_90, %c0_91, %c0_92] : memref<5x80x120xbf16, #tpu.memory_space<vmem>>, vector<1x80x120xbf16>
    %123 = vector.shape_cast %122 : vector<1x80x120xbf16> to vector<80x120xbf16>
    %124 = arith.truncf %121 : vector<1x80xf32> to vector<1x80xbf16>
    %cst_93 = arith.constant dense<0.000000e+00> : vector<1x120xf32>
    %125 = tpu.matmul %124, %123, %cst_93 {dimension_numbers = #tpu.dot_dimension_numbers<[1], [0], [0], [1], [0, 0, 1, 1], [], []>} : vector<1x80xbf16>, vector<80x120xbf16>, vector<1x120xf32> -> vector<1x120xf32>
    %126 = arith.addf %120, %125 : vector<1x120xf32>
    %127 = vector.extract_strided_slice %101 {offsets = [4, 0], sizes = [1, 80], strides = [1, 1]} : vector<5x80xf32> to vector<1x80xf32>
    %c4_94 = arith.constant 4 : index
    %c0_95 = arith.constant 0 : index
    %c0_96 = arith.constant 0 : index
    %128 = vector.load %arg10[%c4_94, %c0_95, %c0_96] : memref<5x80x120xbf16, #tpu.memory_space<vmem>>, vector<1x80x120xbf16>
    %129 = vector.shape_cast %128 : vector<1x80x120xbf16> to vector<80x120xbf16>
    %130 = arith.truncf %127 : vector<1x80xf32> to vector<1x80xbf16>
    %cst_97 = arith.constant dense<0.000000e+00> : vector<1x120xf32>
    %131 = tpu.matmul %130, %129, %cst_97 {dimension_numbers = #tpu.dot_dimension_numbers<[1], [0], [0], [1], [0, 0, 1, 1], [], []>} : vector<1x80xbf16>, vector<80x120xbf16>, vector<1x120xf32> -> vector<1x120xf32>
    %132 = arith.addf %126, %131 : vector<1x120xf32>
    %c0_98 = arith.constant 0 : index
    %c0_99 = arith.constant 0 : index
    %133 = vector.load %arg11[%c0_98, %c0_99] : memref<1x120xf32, #tpu.memory_space<vmem>>, vector<1x120xf32>
    %134 = arith.addf %132, %133 : vector<1x120xf32>
    %cst_100 = arith.constant 0.000000e+00 : f32
    %135 = vector.broadcast %cst_100 : f32 to vector<1x120xf32>
    %136 = arith.maximumf %134, %135 : vector<1x120xf32>
    %c0_101 = arith.constant 0 : index
    %c0_102 = arith.constant 0 : index
    %137 = vector.load %arg12[%c0_101, %c0_102] : memref<120x84xbf16, #tpu.memory_space<vmem>>, vector<120x84xbf16>
    %138 = arith.truncf %136 : vector<1x120xf32> to vector<1x120xbf16>
    %cst_103 = arith.constant dense<0.000000e+00> : vector<1x84xf32>
    %139 = tpu.matmul %138, %137, %cst_103 {dimension_numbers = #tpu.dot_dimension_numbers<[1], [0], [0], [1], [0, 0, 1, 1], [], []>} : vector<1x120xbf16>, vector<120x84xbf16>, vector<1x84xf32> -> vector<1x84xf32>
    %c0_104 = arith.constant 0 : index
    %c0_105 = arith.constant 0 : index
    %140 = vector.load %arg13[%c0_104, %c0_105] : memref<1x84xf32, #tpu.memory_space<vmem>>, vector<1x84xf32>
    %141 = arith.addf %139, %140 : vector<1x84xf32>
    %cst_106 = arith.constant 0.000000e+00 : f32
    %142 = vector.broadcast %cst_106 : f32 to vector<1x84xf32>
    %143 = arith.maximumf %141, %142 : vector<1x84xf32>
    %c0_107 = arith.constant 0 : index
    %c0_108 = arith.constant 0 : index
    %144 = vector.load %arg14[%c0_107, %c0_108] : memref<84x128xbf16, #tpu.memory_space<vmem>>, vector<84x128xbf16>
    %145 = arith.truncf %143 : vector<1x84xf32> to vector<1x84xbf16>
    %cst_109 = arith.constant dense<0.000000e+00> : vector<1x128xf32>
    %146 = tpu.matmul %145, %144, %cst_109 {dimension_numbers = #tpu.dot_dimension_numbers<[1], [0], [0], [1], [0, 0, 1, 1], [], []>} : vector<1x84xbf16>, vector<84x128xbf16>, vector<1x128xf32> -> vector<1x128xf32>
    %c0_110 = arith.constant 0 : index
    %c0_111 = arith.constant 0 : index
    %147 = vector.load %arg15[%c0_110, %c0_111] : memref<1x128xf32, #tpu.memory_space<vmem>>, vector<1x128xf32>
    %148 = arith.addf %146, %147 : vector<1x128xf32>
    %cst_112 = arith.constant 0.000000e+00 : f32
    %149 = vector.broadcast %cst_112 : f32 to vector<1x128xf32>
    %150 = arith.subf %149, %148 : vector<1x128xf32>
    %151 = math.exp %150 : vector<1x128xf32>
    %cst_113 = arith.constant 1.000000e+00 : f32
    %152 = vector.broadcast %cst_113 : f32 to vector<1x128xf32>
    %153 = arith.addf %152, %151 : vector<1x128xf32>
    %cst_114 = arith.constant 1.000000e+00 : f32
    %154 = vector.broadcast %cst_114 : f32 to vector<1x128xf32>
    %155 = arith.divf %154, %153 : vector<1x128xf32>
    %c0_115 = arith.constant 0 : index
    %c0_116 = arith.constant 0 : index
    %c0_117 = arith.constant 0 : index
    %156 = vector.load %arg16[%c0_115, %c0_116, %c0_117] : memref<1x1x128xf32, #tpu.memory_space<vmem>>, vector<1x1x128xf32>
    %157 = vector.shape_cast %156 : vector<1x1x128xf32> to vector<1x128xf32>
    %158 = vector.shape_cast %155 : vector<1x128xf32> to vector<1x1x128xf32>
    tpu.vector_store %arg16[%c0_115, %c0_116, %c0_117], %158 {strides = array<i32>} : memref<1x1x128xf32, #tpu.memory_space<vmem>>, vector<1x1x128xf32>,
    return
  }
  func.func @transform_0(%arg0: i32) -> (i32, i32, i32) {
    %c0_i32 = arith.constant 0 : i32
    %c0_i32_0 = arith.constant 0 : i32
    %c0_i32_1 = arith.constant 0 : i32
    return %arg0, %c0_i32, %c0_i32_0 : i32, i32, i32
  }
  func.func @transform_1(%arg0: i32) -> (i32, i32, i32) {
    %c0_i32 = arith.constant 0 : i32
    %c0_i32_0 = arith.constant 0 : i32
    %c0_i32_1 = arith.constant 0 : i32
    %c0_i32_2 = arith.constant 0 : i32
    return %c0_i32, %c0_i32_0, %c0_i32_1 : i32, i32, i32
  }
  func.func @transform_2(%arg0: i32) -> (i32, i32) {
    %c0_i32 = arith.constant 0 : i32
    %c0_i32_0 = arith.constant 0 : i32
    %c0_i32_1 = arith.constant 0 : i32
    return %c0_i32, %c0_i32_0 : i32, i32
  }
  func.func @transform_3(%arg0: i32) -> (i32, i32, i32) {
    %c0_i32 = arith.constant 0 : i32
    %c0_i32_0 = arith.constant 0 : i32
    %c0_i32_1 = arith.constant 0 : i32
    %c0_i32_2 = arith.constant 0 : i32
    return %c0_i32, %c0_i32_0, %c0_i32_1 : i32, i32, i32
  }
  func.func @transform_4(%arg0: i32) -> (i32, i32, i32) {
    %c0_i32 = arith.constant 0 : i32
    %c0_i32_0 = arith.constant 0 : i32
    %c0_i32_1 = arith.constant 0 : i32
    %c0_i32_2 = arith.constant 0 : i32
    return %c0_i32, %c0_i32_0, %c0_i32_1 : i32, i32, i32
  }
  func.func @transform_5(%arg0: i32) -> (i32, i32, i32) {
    %c0_i32 = arith.constant 0 : i32
    %c0_i32_0 = arith.constant 0 : i32
    %c0_i32_1 = arith.constant 0 : i32
    %c0_i32_2 = arith.constant 0 : i32
    return %c0_i32, %c0_i32_0, %c0_i32_1 : i32, i32, i32
  }
  func.func @transform_6(%arg0: i32) -> (i32, i32) {
    %c0_i32 = arith.constant 0 : i32
    %c0_i32_0 = arith.constant 0 : i32
    %c0_i32_1 = arith.constant 0 : i32
    return %c0_i32, %c0_i32_0 : i32, i32
  }
  func.func @transform_7(%arg0: i32) -> (i32, i32, i32) {
    %c0_i32 = arith.constant 0 : i32
    %c0_i32_0 = arith.constant 0 : i32
    %c0_i32_1 = arith.constant 0 : i32
    %c0_i32_2 = arith.constant 0 : i32
    return %c0_i32, %c0_i32_0, %c0_i32_1 : i32, i32, i32
  }
  func.func @transform_8(%arg0: i32) -> (i32, i32, i32) {
    %c0_i32 = arith.constant 0 : i32
    %c0_i32_0 = arith.constant 0 : i32
    %c0_i32_1 = arith.constant 0 : i32
    %c0_i32_2 = arith.constant 0 : i32
    return %c0_i32, %c0_i32_0, %c0_i32_1 : i32, i32, i32
  }
  func.func @transform_9(%arg0: i32) -> (i32, i32, i32) {
    %c0_i32 = arith.constant 0 : i32
    %c0_i32_0 = arith.constant 0 : i32
    %c0_i32_1 = arith.constant 0 : i32
    %c0_i32_2 = arith.constant 0 : i32
    return %c0_i32, %c0_i32_0, %c0_i32_1 : i32, i32, i32
  }
  func.func @transform_10(%arg0: i32) -> (i32, i32) {
    %c0_i32 = arith.constant 0 : i32
    %c0_i32_0 = arith.constant 0 : i32
    %c0_i32_1 = arith.constant 0 : i32
    return %c0_i32, %c0_i32_0 : i32, i32
  }
  func.func @transform_11(%arg0: i32) -> (i32, i32) {
    %c0_i32 = arith.constant 0 : i32
    %c0_i32_0 = arith.constant 0 : i32
    %c0_i32_1 = arith.constant 0 : i32
    return %c0_i32, %c0_i32_0 : i32, i32
  }
  func.func @transform_12(%arg0: i32) -> (i32, i32) {
    %c0_i32 = arith.constant 0 : i32
    %c0_i32_0 = arith.constant 0 : i32
    %c0_i32_1 = arith.constant 0 : i32
    return %c0_i32, %c0_i32_0 : i32, i32
  }
  func.func @transform_13(%arg0: i32) -> (i32, i32) {
    %c0_i32 = arith.constant 0 : i32
    %c0_i32_0 = arith.constant 0 : i32
    %c0_i32_1 = arith.constant 0 : i32
    return %c0_i32, %c0_i32_0 : i32, i32
  }
  func.func @transform_14(%arg0: i32) -> (i32, i32) {
    %c0_i32 = arith.constant 0 : i32
    %c0_i32_0 = arith.constant 0 : i32
    %c0_i32_1 = arith.constant 0 : i32
    return %c0_i32, %c0_i32_0 : i32, i32
  }
  func.func @transform_15(%arg0: i32) -> (i32, i32, i32) {
    %c0_i32 = arith.constant 0 : i32
    %c0_i32_0 = arith.constant 0 : i32
    %c0_i32_1 = arith.constant 0 : i32
    return %arg0, %c0_i32, %c0_i32_0 : i32, i32, i32
  }
}

</mosaic_0001>

<bundles_post_ra>
// kernel: net_forward.1
= control target key start
LH: loop header
LB: loop body
LE: loop exit
PB: predicated region body
PF: predicated region fallthrough
CT: control target
= control target key end

     0   :  { %s3887_s18 = smov 0   ;;  %s4592_s0 = inlined_call_operand.vmem [shape: f32[2,32,32], index: 0, kind: input, shape index: {}]   ;;  %s4593_s1 = inlined_call_operand.vmem [shape: bf16[5,32,168], index: 1, kind: input, shape index: {}]   ;;  %s4594_s2 = inlined_call_operand.vmem [shape: f32[1,168], index: 2, kind: input, shape index: {}]   ;;  %s4595_s3 = inlined_call_operand.vmem [shape: bf16[2,14,28], index: 3, kind: input, shape index: {}]   ;;  %s4596_s4 = inlined_call_operand.vmem [shape: bf16[2,168,84], index: 4, kind: input, shape index: {}]   ;;  %s4597_s5 = inlined_call_operand.vmem [shape: bf16[5,84,160], index: 5, kind: input, shape index: {}]   ;;  %s4598_s6 = inlined_call_operand.vmem [shape: f32[1,160], index: 6, kind: input, shape index: {}]   ;;  %s4599_s7 = inlined_call_operand.vmem [shape: bf16[2,5,10], index: 7, kind: input, shape index: {}]   ;;  %s4600_s8 = inlined_call_operand.vmem [shape: bf16[2,160,80], index: 8, kind: input, shape index: {}]   ;;  %s4601_s9 = inlined_call_operand.vmem [shape: bf16[5,80,120], index: 9, kind: input, shape index: {}]   ;;  %s4602_s10 = inlined_call_operand.vmem [shape: f32[1,120], index: 10, kind: input, shape index: {}]   ;;  %s4603_s11 = inlined_call_operand.vmem [shape: bf16[120,84], index: 11, kind: input, shape index: {}]   ;;  %s4604_s12 = inlined_call_operand.vmem [shape: f32[1,84], index: 12, kind: input, shape index: {}]   ;;  %s4605_s13 = inlined_call_operand.vmem [shape: bf16[84,128], index: 13, kind: input, shape index: {}]   ;;  %s4606_s14 = inlined_call_operand.vmem [shape: f32[1,128], index: 14, kind: input, shape index: {}]   ;;  %s4607_s15 = inlined_call_operand.vmem [shape: f32[2,1,128], index: 15, kind: output, shape index: {}]  }
   0x1 LB: > { %s3071_s19 = sadd.s32 4294967295, %s3802_s18   ;;  %p3075_p0 = scmp.ge.s32.totalorder %s3802_s18, 1  ;;  %s3802_s18 = sphi %s3887_s18, %s25_s18  }
   0x2   : > { %p437_p1 = scmp.lt.s32.totalorder %s3802_s18, 3 }
   0x4   : > { %p438_p2 = pnand %p3075_p0, %p437_p1 }
   0x5   : > { %p483_p3 = scmp.lt.s32.totalorder (!%p438_p2), %s3071_s19, 1 }
   0x6   : > { %441 = sbr.rel (%p438_p2) target bundleno = 2028 (0x7ec), region = 80 }
   0xb   : > { %v3594_v0 = vld [vmem:[%s4593_s1 + $0x34] ss:$8 sps:$4 sm:$0xff]   ;;  %v3596_v1 = vld [vmem:[%s4593_s1 + $0x30] ss:$8 sps:$4 sm:$0xff]   ;;  %v3804_v2 = vmov 0   ;;  %s4609_s19 = smov (!%p483_p3, %s3071_s19), 1 }
   0xc   : > { %592 = vmatprep.mubr.bf16.mxu1 %v3804_v2  ;;  %582 = vmatprep.mubr.bf16.mxu0 %v3804_v2  ;;  %v3597_v3 = vld [vmem:[%s4593_s1 + $0x24] ss:$8 sps:$4 sm:$0xff]   ;;  %v3599_v4 = vld [vmem:[%s4593_s1 + $0x20] ss:$8 sps:$4 sm:$0xff]   ;;  %v3602_v5 = vld [vmem:[%s4593_s1 + $0x14] ss:$8 sps:$4 sm:$0xff]   ;;  %s490_s16 = scalar_lea.vmem %s4607_s15, %s4609_s19 }
   0xd   : > { %3579 = vmatprep.subr.bf16.mxu1 %v3594_v0  ;;  %562 = vmatprep.subr.bf16.mxu0 %v3594_v0  ;;  %s3426_s30 = sshll.u32 %s4609_s19, 5  ;;  %v3605_v6 = vld [vmem:[%s4593_s1 + $0x54] ss:$8 sps:$4 sm:$0xff]   ;;  %vm543_vm0 = vcmask 261120   ;;  %vm687_vm1 = vcmask 1046528   ;;  %vm883_vm4 = vcmask 1045504  }
   0xe   : > { %3581 = vmatpush1.bf16.msra.mxu1 %v3596_v1  ;;  %563 = vmatpush1.bf16.msra.mxu0 %v3596_v1  ;;  %s487_s20 = scalar_lea.vmem %s4592_s0, %s3426_s30  ;;  %v3600_v18 = vld [vmem:[%s4593_s1 + $0x10] ss:$8 sps:$4 sm:$0xff]   ;;  %vm507_vm2 = vsmask.f32 7424  ;;  %v3608_v22 = vld [vmem:[%s4593_s1 + $0x4] ss:$8 sps:$4 sm:$0xff]  }
   0xf   : > { %3580 = vmatprep.subr.bf16.mxu1 %v3597_v3  ;;  %564 = vmatprep.subr.bf16.mxu0 %v3597_v3  ;;  %v494_v7 = vld [vmem:[%s487_s20 + $0x10] sm:$0xff]  ;;  %v495_v8 = vld [vmem:[%s487_s20 + $0x18] sm:$0xff]  ;;  %v492_v9 = vld [vmem:[%s487_s20] sm:$0xff]  ;;  %vm783_vm3 = vsmask.f32 6400  ;;  %vm1013_vm5 = vcmask 228352  }
  0x10   : > { %v3921_v10 = vpack.c.bf16 %v495_v8, %v494_v7  ;;  %v493_v11 = vld [vmem:[%s487_s20 + $0x8] sm:$0xff]  ;;  %v3603_v20 = vld [vmem:[%s4593_s1 + $0x50] ss:$8 sps:$4 sm:$0xff]   ;;  %v3614_v32 = vld [vmem:[%s4593_s1 + $0x74] ss:$8 sps:$4 sm:$0xff]   ;;  %vm1215_vm6 = vcmask 1043456  }
  0x11   : > { %v3923_v12 = vpack.c.bf16 %v493_v11, %v492_v9  ;;  %v3606_v25 = vld [vmem:[%s4593_s1] ss:$8 sps:$4 sm:$0xff]   ;;  %v3611_v26 = vld [vmem:[%s4593_s1 + $0x44] ss:$8 sps:$4 sm:$0xff]   ;;  %v3617_v35 = vld [vmem:[%s4593_s1 + $0x94] ss:$8 sps:$4 sm:$0xff]  }
  0x12   : > { %3582 = vmatpush1.bf16.msra.mxu1 %v3599_v4  ;;  %565 = vmatpush1.bf16.msra.mxu0 %v3599_v4  ;;  %v516_v13 = vshll.u32 %v3921_v10, 16  ;;  %v520_v14 = vshrl.u32 %v3921_v10, 16  ;;  %v689_v28 = vrot.slane %v3921_v10, 1  ;;  %v3609_v34 = vld [vmem:[%s4593_s1 + $0x40] ss:$8 sps:$4 sm:$0xff]   ;;  %v885_v46 = vrot.slane %v3921_v10, 2 }
  0x13   : > { %639 = vmatprep.subr.bf16.mxu1 %v3602_v5  ;;  %729 = vmatprep.subr.bf16.mxu0 %v3605_v6  ;;  %v509_v15 = vshrl.u32 %v3923_v12, 16  ;;  %v511_v16 = vshll.u32 %v3923_v12, 16  ;;  %v688_v27 = vrot.slane %v3923_v12, 1  ;;  %v3612_v36 = vld [vmem:[%s4593_s1 + $0x70] ss:$8 sps:$4 sm:$0xff]   ;;  %v884_v45 = vrot.slane %v3923_v12, 2 }
  0x14   : > { %v518_v17 = vrot.slane %v516_v13, 1  ;;  %v787_v23 = vrot.slane %v520_v14, 1  ;;  %v788_v29 = vrot.slane %v516_v13, 2  ;;  %v3620_v37 = vld [vmem:[%s4593_s1 + $0x64] ss:$8 sps:$4 sm:$0xff]   ;;  %v3626_v49 = vld [vmem:[%s4596_s4 + $0x38] sm:$0xff]  }
  0x15   : > { %v513_v19 = vrot.slane %v511_v16, 1  ;;  %v784_v30 = vrot.slane %v509_v15, 1  ;;  %v785_v31 = vrot.slane %v511_v16, 2  ;;  %v3615_v38 = vld [vmem:[%s4593_s1 + $0x90] ss:$8 sps:$4 sm:$0xff]   ;;  %v690_v40 = vsel %vm687_vm1, %v688_v27, %v689_v28  ;;  %v3630_v51 = vld [vmem:[%s4596_s4 + $0x28] sm:$0xff]  }
  0x16   : > { %v522_v21 = vor.u32 %v520_v14, %v518_v17  ;;  %v3623_v39 = vld [vmem:[%s4593_s1 + $0x84] ss:$8 sps:$4 sm:$0xff]   ;;  %v3618_v41 = vld [vmem:[%s4593_s1 + $0x60] ss:$8 sps:$4 sm:$0xff]   ;;  %v789_v44 = vor.u32 %v788_v29, %v787_v23  ;;  %v886_v48 = vsel %vm883_vm4, %v884_v45, %v885_v46  ;;  %v3628_v50 = vld [vmem:[%s4596_s4 + $0x30] sm:$0xff]   ;;  %vm1481_vm7 = vcmask 1041408  }
  0x17   : > { %v514_v24 = vor.u32 %v513_v19, %v509_v15  ;;  %v3621_v42 = vld [vmem:[%s4593_s1 + $0x80] ss:$8 sps:$4 sm:$0xff]   ;;  %v786_v43 = vor.u32 %v785_v31, %v784_v30  ;;  %v3634_v53 = vld [vmem:[%s4596_s4 + $0x18] sm:$0xff]   ;;  %v3636_v54 = vld [vmem:[%s4596_s4 + $0x10] sm:$0xff]   ;;  %vm1211_vm8 = vcmask 326656   ;;  %vm1477_vm9 = vcmask 687104  }
  0x18   : > { %3087 = vmatmul.mubr.msk.bf16.vlgmr.msra.gmra.mxu1 %vm543_vm0, %v522_v21  ;;  %v3632_v52 = vld [vmem:[%s4596_s4 + $0x20] sm:$0xff]   ;;  %vm2039_vm10 = vcmask 1044480   ;;  %vm2035_vm11 = vcmask 80896   ;;  %vm3806_vm12 = vmmov 0   ;;  %vm2437_vm13 = vcmask 654336  }
  0x19   : > { %v519_v33 = vsel %vm507_vm2, %v514_v24, %v518_v17  ;;  %640 = vmatpush1.bf16.msra.mxu1 %v3600_v18  ;;  %659 = vmatprep.mubr.bf16.mxu1 %v3804_v2  ;;  %v790_v47 = vsel %vm783_vm3, %v786_v43, %v789_v44  ;;  %v976_v18 = vlaneseq  ;;  %v974_v45 = vld [vmem:[%s4594_s2] sm:$0x3]  ;;  %vm2877_vm14 = vcmask 982016  }
  0x1a   : > { %3086 = vmatmul.mubr.msk.bf16.vlgmr.msra.gmra.mxu0 %vm543_vm0, %v519_v33  ;;  %641 = vmatprep.subr.bf16.mxu1 %v3608_v22 }
  0x1b   : > { %730 = vmatpush1.bf16.msra.mxu0 %v3603_v20  ;;  %749 = vmatprep.mubr.bf16.mxu0 %v3804_v2  ;;  %v4023_v27 = vshrl.u32 %v976_v18, 7 }
  0x1c   : > { %731 = vmatprep.subr.bf16.mxu0 %v3611_v26 }
  0x1d   : > { %642 = vmatpush1.bf16.msra.mxu1 %v3606_v25 }
  0x1e   : > { %829 = vmatprep.subr.bf16.mxu1 %v3614_v32 }
  0x1f   : > { %732 = vmatpush1.bf16.msra.mxu0 %v3609_v34 }
  0x20   : > { %3092 = vmatmul.mubr.msk.bf16.vlgmr.msra.gmra.mxu1 %vm543_vm0, %v3923_v12  ;;  %925 = vmatprep.subr.bf16.mxu0 %v3617_v35 }
  0x21   : > { %669 = vmatprep.mubr.bf16.mxu1 %v3804_v2  ;;  %830 = vmatpush1.bf16.msra.mxu1 %v3612_v36 }
  0x22   : > { %3102 = vmatmul.mubr.msk.bf16.vlgmr.msra.gmra.mxu0 %vm543_vm0, %v690_v40  ;;  %831 = vmatprep.subr.bf16.mxu1 %v3620_v37 }
  0x23   : > { %759 = vmatprep.mubr.bf16.mxu0 %v3804_v2  ;;  %926 = vmatpush1.bf16.msra.mxu0 %v3615_v38 }
  0x24   : > { %927 = vmatprep.subr.bf16.mxu0 %v3623_v39 }
  0x25   : > { %832 = vmatpush1.bf16.msra.mxu1 %v3618_v41 }
  0x27   : > { %928 = vmatpush1.bf16.msra.mxu0 %v3621_v42  ;;  %v978_v42 = vsub.s32 0, %v4023_v27 }
  0x28   : > { %3093 = vmatmul.mubr.msk.bf16.gmra.mxu1 %vm543_vm0, %v3921_v10  ;;  %1219 = vmatprep.subr.bf16.mxu0 %v3804_v2 }
  0x29   : > { %849 = vmatprep.mubr.bf16.mxu1 %v3804_v2 }
  0x2a   : > { %3103 = vmatmul.mubr.msk.bf16.gmra.mxu0 %vm543_vm0, %v689_v28 }
  0x2b   : > { %945 = vmatprep.mubr.bf16.mxu0 %v3804_v2 }
  0x30   : > { %3112 = vmatmul.mubr.msk.bf16.vlgmr.msra.gmra.mxu1 %vm543_vm0, %v790_v47  ;;  %v982_v47 = vsub.s32 1, %v4023_v27 }
  0x31   : > { %859 = vmatprep.mubr.bf16.mxu1 %v3804_v2 }
  0x32   : > { %3122 = vmatmul.mubr.msk.bf16.vlgmr.msra.gmra.mxu0 %vm543_vm0, %v886_v48 }
  0x33   : > { %955 = vmatprep.mubr.bf16.mxu0 %v3804_v2  ;;  %1220 = vmatpush1.bf16.msra.mxu0 %v3626_v49 }
  0x34   : > { %1221 = vmatprep.subr.bf16.mxu0 %v3804_v2 }
  0x37   : > { %1222 = vmatpush1.bf16.msra.mxu0 %v3628_v50 }
  0x38   : > { %3113 = vmatmul.mubr.msk.bf16.gmra.mxu1 %vm543_vm0, %v789_v44  ;;  %1223 = vmatprep.subr.bf16.mxu0 %v3804_v2 }
  0x39   : > { %1056 = vmatprep.mubr.bf16.mxu1 %v3804_v2 }
  0x3a   : > { %3123 = vmatmul.mubr.msk.bf16.gmra.mxu0 %vm543_vm0, %v885_v46 }
  0x3b   : > { %1224 = vmatpush1.bf16.msra.mxu0 %v3630_v51 }
  0x3c   : > { %1225 = vmatprep.subr.bf16.mxu0 %v3804_v2 }
  0x3f   : > { %1226 = vmatpush1.bf16.msra.mxu0 %v3632_v52 }
  0x40   : > { %1227 = vmatprep.subr.bf16.mxu0 %v3804_v2 }
  0x43   : > { %1228 = vmatpush1.bf16.msra.mxu0 %v3634_v53 }
  0x44   : > { %1229 = vmatprep.subr.bf16.mxu0 %v3804_v2 }
  0x47   : > { %1230 = vmatpush1.bf16.msra.mxu0 %v3636_v54 }
  0x48   : > { %1231 = vmatprep.subr.bf16.mxu0 %v3804_v2 }
  0xd8   : > { %v594_v55 = vpop.f32.mrf.mxu1 }
  0xda   : > { %v584_v56 = vpop.f32.mrf.mxu0  ;;  %v596_v57 = vpop.f32.mrf.mxu1 }
  0xdc   : > { %v586_v58 = vpop.f32.mrf.mxu0  ;;  %v598_v59 = vpop.f32.mrf.mxu1 }
  0xde   : > { %v588_v60 = vpop.f32.mrf.mxu0  ;;  %v600_v61 = vpop.f32.mrf.mxu1 }
  0xe0   : > { %v590_v62 = vpop.f32.mrf.mxu0  ;;  %v661_v63 = vpop.f32.mrf.mxu1 }
  0xe1   : > { %v662_v32 = vadd.f32 %v661_v63, %v584_v56 }
  0xe2   : > { %v751_v0 = vpop.f32.mrf.mxu0  ;;  %v663_v1 = vpop.f32.mrf.mxu1 }
  0xe3   : > { %v664_v22 = vadd.f32 %v663_v1, %v586_v58  ;;  %v770_v49 = vadd.f32 %v751_v0, %v662_v32  ;;  %v983_v1 = vrot.slane %v974_v45, %v982_v47  ;;  %v3627_v32 = vld [vmem:[%s4596_s4 + $0x8c] sm:$0xff]  }
  0xe4   : > { %v753_v3 = vpop.f32.mrf.mxu0  ;;  %v665_v4 = vpop.f32.mrf.mxu1 }
  0xe5   : > { %v666_v26 = vadd.f32 %v665_v4, %v588_v60  ;;  %v771_v33 = vadd.f32 %v753_v3, %v664_v22 }
  0xe6   : > { %v755_v5 = vpop.f32.mrf.mxu0  ;;  %v667_v6 = vpop.f32.mrf.mxu1 }
  0xe7   : > { %v668_v20 = vadd.f32 %v667_v6, %v590_v62  ;;  %v772_v41 = vadd.f32 %v755_v5, %v666_v26 }
  0xe8   : > { %v757_v7 = vpop.f32.mrf.mxu0  ;;  %v671_v8 = vpop.f32.mrf.mxu1 }
  0xe9   : > { %v672_v21 = vadd.f32 %v671_v8, %v594_v55  ;;  %v773_v30 = vadd.f32 %v757_v7, %v668_v20 }
  0xea   : > { %v761_v9 = vpop.f32.mrf.mxu0  ;;  %v673_v10 = vpop.f32.mrf.mxu1 }
  0xeb   : > { %v674_v25 = vadd.f32 %v673_v10, %v596_v57  ;;  %v774_v31 = vadd.f32 %v761_v9, %v672_v21 }
  0xec   : > { %v763_v11 = vpop.f32.mrf.mxu0  ;;  %v675_v12 = vpop.f32.mrf.mxu1 }
  0xed   : > { %v676_v34 = vadd.f32 %v675_v12, %v598_v59  ;;  %v775_v37 = vadd.f32 %v763_v11, %v674_v25  ;;  %v979_v59 = vrot.slane %v974_v45, %v978_v42 }
  0xee   : > { %v765_v13 = vpop.f32.mrf.mxu0  ;;  %v677_v14 = vpop.f32.mrf.mxu1 }
  0xef   : > { %v678_v38 = vadd.f32 %v677_v14, %v600_v61  ;;  %v776_v50 = vadd.f32 %v765_v13, %v676_v34  ;;  %v3631_v34 = vld [vmem:[%s4596_s4 + $0x7c] sm:$0xff]  }
  0xf0   : > { %v767_v15 = vpop.f32.mrf.mxu0  ;;  %v851_v16 = vpop.f32.mrf.mxu1 }
  0xf1   : > { %v777_v55 = vadd.f32 %v767_v15, %v678_v38  ;;  %v870_v58 = vadd.f32 %v851_v16, %v770_v49  ;;  %v3638_v38 = vld [vmem:[%s4596_s4 + $0x8] sm:$0xff]   ;;  %v3645_v49 = vld [vmem:[%s4596_s4 + $0x9c] sm:$0xff]  }
  0xf2   : > { %v947_v17 = vpop.f32.mrf.mxu0  ;;  %v853_v19 = vpop.f32.mrf.mxu1  ;;  %1232 = vmatpush1.bf16.msra.mxu0 %v3638_v38 }
  0xf3   : > { %v871_v46 = vadd.f32 %v853_v19, %v771_v33  ;;  %v966_v10 = vadd.f32 %v947_v17, %v870_v58  ;;  %v3629_v33 = vld [vmem:[%s4596_s4 + $0x84] sm:$0xff]   ;;  %1233 = vmatprep.subr.bf16.mxu0 %v3804_v2 }
  0xf4   : > { %v949_v23 = vpop.f32.mrf.mxu0  ;;  %v855_v24 = vpop.f32.mrf.mxu1 }
  0xf5   : > { %v872_v51 = vadd.f32 %v855_v24, %v772_v41  ;;  %v967_v63 = vadd.f32 %v949_v23, %v871_v46  ;;  %v986_v21 = vadd.f32 %v979_v59, %v966_v10  ;;  %v3641_v41 = vld [vmem:[%s4596_s4 + $0x54] sm:$0xff]   ;;  %v3652_v10 = vld [vmem:[%s4597_s5 + $0x44] ss:$8 sps:$4 sm:$0xff]  }
  0xf6   : > { %v951_v28 = vpop.f32.mrf.mxu0  ;;  %v857_v29 = vpop.f32.mrf.mxu1 }
  0xf7   : > { %v873_v39 = vadd.f32 %v857_v29, %v773_v30  ;;  %v968_v3 = vadd.f32 %v951_v28, %v872_v51  ;;  %v987_v12 = vadd.f32 %v983_v1, %v967_v63  ;;  %v994_v17 = vmax.f32 %v986_v21, 0.0  ;;  %v3624_v30 = vld [vmem:[%s4595_s3] sm:$0x7f]   ;;  %v3647_v51 = vld [vmem:[%s4596_s4 + $0x94] sm:$0xff]  }
  0xf8   : > { %v953_v35 = vpop.f32.mrf.mxu0  ;;  %v861_v36 = vpop.f32.mrf.mxu1  ;;  %v3661_v21 = vld [vmem:[%s4597_s5 + $0x20] ss:$8 sps:$4 sm:$0xff]  }
  0xf9   : > { %v874_v40 = vadd.f32 %v861_v36, %v774_v31  ;;  %v969_v56 = vadd.f32 %v953_v35, %v873_v39  ;;  %v988_v14 = vadd.f32 %v979_v59, %v968_v3  ;;  %v995_v23 = vmax.f32 %v987_v12, 0.0  ;;  %v3625_v31 = vld [vmem:[%s4595_s3 + $0x8] sm:$0x7f]   ;;  %v3633_v35 = vld [vmem:[%s4596_s4 + $0x74] sm:$0xff]   ;;  %v3639_v39 = vld [vmem:[%s4596_s4 + $0x5c] sm:$0xff]  }
  0xfa   : > { %v957_v43 = vpop.f32.mrf.mxu0  ;;  %v863_v44 = vpop.f32.mrf.mxu1  ;;  %v3635_v36 = vld [vmem:[%s4596_s4 + $0x6c] sm:$0xff]   ;;  %v3660_v12 = vld [vmem:[%s4597_s5 + $0x9c] ss:$8 sps:$4 sm:$0xff]  }
  0xfb   : > { %v875_v48 = vadd.f32 %v863_v44, %v775_v37  ;;  %v970_v52 = vadd.f32 %v957_v43, %v874_v40  ;;  %v989_v7 = vadd.f32 %v983_v1, %v969_v56  ;;  %v996_v25 = vmax.f32 %v988_v14, 0.0  ;;  %v3637_v37 = vld [vmem:[%s4596_s4 + $0x64] sm:$0xff]   ;;  %v3642_v43 = vld [vmem:[%s4596_s4 + $0x50] ss:$0 sps:$4 sm:$0xff]   ;;  %v3658_v14 = vld [vmem:[%s4597_s5 + $0x98] ss:$8 sps:$4 sm:$0xff]  }
  0xfc   : > { %v959_v53 = vpop.f32.mrf.mxu0  ;;  %v865_v54 = vpop.f32.mrf.mxu1  ;;  %v3640_v40 = vld [vmem:[%s4596_s4] sm:$0xff]   ;;  %v1217_v45 = vsel %vm1215_vm6, %v3642_v43, 0 }
  0xfd   : > { %v971_v57 = vadd.f32 %v959_v53, %v875_v48  ;;  %v876_v60 = vadd.f32 %v865_v54, %v776_v50  ;;  %v990_v4 = vadd.f32 %v979_v59, %v970_v52  ;;  %v997_v18 = vmax.f32 %v989_v7, 0.0  ;;  %1234 = vmatpush1.bf16.msra.mxu0 %v3640_v40  ;;  %v3643_v44 = vld [vmem:[%s4596_s4 + $0xa4] ss:$0 sps:$4 sm:$0xff]   ;;  %v3644_v48 = vld [vmem:[%s4596_s4 + $0x48] sm:$0xff]   ;;  %v1402_v52 = vld [vmem:[%s4597_s5 + $0x50] sm:$0x33] }
  0xfe   : > { %v961_v61 = vpop.f32.mrf.mxu0  ;;  %v867_v62 = vpop.f32.mrf.mxu1  ;;  %v1004_v29 = vpack.c.bf16 %v996_v25, %v994_v17  ;;  %1245 = vmatprep.subr.bf16.mxu0 %v3804_v2  ;;  %v1346_v46 = vsel %vm1215_vm6, %v3643_v44, 0  ;;  %v3646_v50 = vld [vmem:[%s4596_s4 + $0x40] sm:$0xff]   ;;  %v3213_v53 = vcombine.high %v1402_v52, %v1402_v52  ;;  %v3187_v54 = vld [vmem:[%s4597_s5 + $0xa8] sm:$0x33] }
  0xff   : > { %v877_v0 = vadd.f32 %v867_v62, %v777_v55  ;;  %v972_v5 = vadd.f32 %v961_v61, %v876_v60  ;;  %v991_v8 = vadd.f32 %v983_v1, %v971_v57  ;;  %v998_v15 = vmax.f32 %v990_v4, 0.0  ;;  %v3670_v25 = vld [vmem:[%s4597_s5 + $0x78] ss:$8 sps:$4 sm:$0xff]   ;;  %v3678_v17 = vld [vmem:[%s4597_s5 + $0x6c] ss:$8 sps:$4 sm:$0xff]  }
 0x100   : > { %v963_v6 = vpop.f32.mrf.mxu0  ;;  %v1005_v28 = vpack.c.bf16 %v997_v18, %v995_v23  ;;  %v3199_v55 = vcombine.high %v3187_v54, %v3187_v54  ;;  %v3198_v3 = vcombine.low %v3187_v54, %v3187_v54  ;;  %v3655_v18 = vld [vmem:[%s4597_s5 + $0x30] ss:$8 sps:$4 sm:$0xff]  }
 0x101   : > { %v973_v9 = vadd.f32 %v963_v6, %v877_v0  ;;  %v992_v11 = vadd.f32 %v979_v59, %v972_v5  ;;  %v999_v19 = vmax.f32 %v991_v8, 0.0  ;;  %1246 = vmatpush2.bf16.msra.mxu0 %v1217_v45  ;;  %v3212_v0 = vcombine.low %v1402_v52, %v1402_v52  ;;  %v3667_v23 = vld [vmem:[%s4597_s5 + $0x10] ss:$8 sps:$4 sm:$0xff]  }
 0x102   : > { %1247 = vmatprep.subr.bf16.mxu0 %v3804_v2  ;;  %v3684_v54 = vld [vmem:[%s4597_s5 + $0x148] ss:$8 sps:$4 sm:$0xff]  }
 0x103   : > { %v993_v13 = vadd.f32 %v983_v1, %v973_v9  ;;  %v1000_v16 = vmax.f32 %v992_v11, 0.0  ;;  %v1589_v9 = vsel %vm1481_vm7, %v3212_v0, 0  ;;  %v1483_v11 = vsel %vm1481_vm7, %v3198_v3, 0  ;;  %v3695_v0 = vld [vmem:[%s4597_s5 + $0x128] ss:$8 sps:$4 sm:$0xff]  }
 0x104   : > { %v3703_v3 = vld [vmem:[%s4597_s5 + $0x11c] ss:$8 sps:$4 sm:$0xff]  }
 0x105   : > { %v1001_v20 = vmax.f32 %v993_v13, 0.0  ;;  %v1006_v22 = vpack.c.bf16 %v1000_v16, %v998_v15  ;;  %1248 = vmatpush2.bf16.msra.mxu0 %v3644_v48  ;;  %v3650_v13 = vld [vmem:[%s4597_s5 + $0x40] ss:$8 sps:$4 sm:$0xff]   ;;  %v3657_v15 = vld [vmem:[%s4597_s5 + $0x34] ss:$8 sps:$4 sm:$0xff]  }
 0x106   : > { %1249 = vmatprep.subr.bf16.mxu0 %v3804_v2  ;;  %v3666_v16 = vld [vmem:[%s4597_s5 + $0x8c] ss:$8 sps:$4 sm:$0xff]  }
 0x107   : > { %v1007_v24 = vpack.c.bf16 %v1001_v20, %v999_v19  ;;  %v1019_v26 = vsel %vm883_vm4, %v1006_v22, 0  ;;  %v3664_v19 = vld [vmem:[%s4597_s5 + $0x88] ss:$8 sps:$4 sm:$0xff]   ;;  %v3663_v20 = vld [vmem:[%s4597_s5 + $0x24] ss:$8 sps:$4 sm:$0xff]  }
 0x108   : > { %v3669_v22 = vld [vmem:[%s4597_s5 + $0x14] ss:$8 sps:$4 sm:$0xff]  }
 0x109   : > { %3125 = vmatprep.subr.msk.bf16.mxu1 %vm883_vm4, %v1007_v24  ;;  %1250 = vmatpush2.bf16.msra.mxu0 %v3646_v50 }
 0x10a   : > { %1037 = vmatpush1.bf16.msra.mxu1 %v1019_v26  ;;  %3200 = vmatprep.subr.msk.bf16.mxu0 %vm1481_vm7, %v3199_v55 }
 0x10b   : > { %1038 = vmatprep.subr.bf16.mxu1 %v1005_v28 }
 0x10e   : > { %1039 = vmatpush1.bf16.msra.mxu1 %v1004_v29 }
 0x10f   : > { %3130 = vmatprep.subr.msk.bf16.mxu1 %vm883_vm4, %v1007_v24  ;;  %v3672_v24 = vld [vmem:[%s4597_s5 + $0x7c] ss:$8 sps:$4 sm:$0xff]  }
 0x111   : > { %3126 = vmatmul.mubr.msk.bf16.vlgmr.msra.gmra.mxu1 %vm1013_vm5, %v3624_v30  ;;  %v3251_v30 = vld [vmem:[%s4597_s5 + $0x158] sm:$0x33] }
 0x112   : > { %1091 = vmatpush1.bf16.msra.mxu1 %v1019_v26  ;;  %1110 = vmatprep.mubr.bf16.mxu1 %v3804_v2  ;;  %v3675_v26 = vld [vmem:[%s4597_s5 + $0x4] ss:$8 sps:$4 sm:$0xff]   ;;  %v3262_v40 = vcombine.low %v3251_v30, %v3251_v30 }
 0x113   : > { %1092 = vmatprep.subr.bf16.mxu1 %v1005_v28  ;;  %v3673_v28 = vld [vmem:[%s4597_s5] ss:$8 sps:$4 sm:$0xff]  }
 0x114   : > { %v1836_v50 = vsel %vm1481_vm7, %v3262_v40, 0 }
 0x116   : > { %1093 = vmatpush1.bf16.msra.mxu1 %v1004_v29  ;;  %v3676_v29 = vld [vmem:[%s4597_s5 + $0x68] ss:$8 sps:$4 sm:$0xff]  }
 0x117   : > { %1348 = vmatprep.subr.bf16.mxu1 %v3804_v2 }
 0x119   : > { %3131 = vmatmul.mubr.msk.bf16.vlgmr.msra.gmra.mxu1 %vm1013_vm5, %v3625_v31  ;;  %v3263_v31 = vcombine.high %v3251_v30, %v3251_v30  ;;  %v3727_v30 = vld [vmem:[%s4597_s5 + $0x170] ss:$8 sps:$4 sm:$0xff]  }
 0x11a   : > { %1349 = vmatpush1.bf16.msra.mxu1 %v3627_v32  ;;  %v3683_v32 = vld [vmem:[%s4597_s5 + $0x5c] ss:$8 sps:$4 sm:$0xff]  }
 0x11b   : > { %1350 = vmatprep.subr.bf16.mxu1 %v3804_v2 }
 0x11e   : > { %1351 = vmatpush1.bf16.msra.mxu1 %v3629_v33  ;;  %v3681_v33 = vld [vmem:[%s4597_s5 + $0x58] ss:$8 sps:$4 sm:$0xff]  }
 0x11f   : > { %1352 = vmatprep.subr.bf16.mxu1 %v3804_v2 }
 0x122   : > { %1353 = vmatpush1.bf16.msra.mxu1 %v3631_v34  ;;  %v3226_v34 = vld [vmem:[%s4597_s5 + $0x100] sm:$0x33] }
 0x123   : > { %1354 = vmatprep.subr.bf16.mxu1 %v3804_v2 }
 0x126   : > { %1355 = vmatpush1.bf16.msra.mxu1 %v3633_v35  ;;  %v3238_v35 = vcombine.high %v3226_v34, %v3226_v34 }
 0x127   : > { %1356 = vmatprep.subr.bf16.mxu1 %v3804_v2 }
 0x12a   : > { %1357 = vmatpush1.bf16.msra.mxu1 %v3635_v36 }
 0x12b   : > { %1358 = vmatprep.subr.bf16.mxu1 %v3804_v2 }
 0x12e   : > { %1359 = vmatpush1.bf16.msra.mxu1 %v3637_v37 }
 0x12f   : > { %1360 = vmatprep.subr.bf16.mxu1 %v3804_v2 }
 0x132   : > { %1361 = vmatpush1.bf16.msra.mxu1 %v3639_v39 }
 0x133   : > { %1362 = vmatprep.subr.bf16.mxu1 %v3804_v2 }
 0x136   : > { %1363 = vmatpush1.bf16.msra.mxu1 %v3641_v41 }
 0x137   : > { %1374 = vmatprep.subr.bf16.mxu1 %v3804_v2 }
 0x13a   : > { %1375 = vmatpush2.bf16.msra.mxu1 %v1346_v46 }
 0x13b   : > { %1376 = vmatprep.subr.bf16.mxu1 %v3804_v2 }
 0x13e   : > { %1377 = vmatpush2.bf16.msra.mxu1 %v3645_v49 }
 0x13f   : > { %1378 = vmatprep.subr.bf16.mxu1 %v3804_v2 }
 0x142   : > { %1379 = vmatpush2.bf16.msra.mxu1 %v3647_v51  ;;  %v3686_v51 = vld [vmem:[%s4597_s5 + $0x14c] ss:$8 sps:$4 sm:$0xff]  }
 0x143   : > { %3214 = vmatprep.subr.msk.bf16.mxu1 %vm1481_vm7, %v3213_v53  ;;  %v3237_v53 = vcombine.low %v3226_v34, %v3226_v34  ;;  %v3733_v34 = vld [vmem:[%s4600_s8 + $0x38] sm:$0xff]  }
 0x1d1   : > { %v1058_v56 = vpop.f32.mrf.mxu1 }
 0x1d3   : > { %v1060_v57 = vpop.f32.mrf.mxu1 }
 0x1d5   : > { %v1062_v58 = vpop.f32.mrf.mxu1 }
 0x1d7   : > { %v1064_v59 = vpop.f32.mrf.mxu1 }
 0x1d9   : > { %v1112_v60 = vpop.f32.mrf.mxu1 }
 0x1da   : > { %v1121_v6 = vmax.f32 %v1058_v56, %v1112_v60  ;;  %v3694_v60 = vld [vmem:[%s4597_s5 + $0xf4] ss:$8 sps:$4 sm:$0xff]  }
 0x1db   : > { %v1114_v61 = vpop.f32.mrf.mxu1 }
 0x1dc   : > { %v1122_v4 = vmax.f32 %v1060_v57, %v1114_v61  ;;  %v3691_v57 = vld [vmem:[%s4597_s5 + $0x13c] ss:$8 sps:$4 sm:$0xff]   ;;  %v3689_v61 = vld [vmem:[%s4597_s5 + $0x138] ss:$8 sps:$4 sm:$0xff]  }
 0x1dd   : > { %v1116_v62 = vpop.f32.mrf.mxu1 }
 0x1de   : > { %v1123_v63 = vmax.f32 %v1062_v58, %v1116_v62  ;;  %v3697_v62 = vld [vmem:[%s4597_s5 + $0x12c] ss:$8 sps:$4 sm:$0xff]  }
 0x1df   : > { %v1118_v1 = vpop.f32.mrf.mxu1 }
 0x1e0   : > { %v1124_v5 = vmax.f32 %v1064_v59, %v1118_v1  ;;  %v1146_v8 = vpack.c.bf16 %v1123_v63, %v1121_v6  ;;  %v1710_v59 = vsel %vm1481_vm7, %v3237_v53, 0  ;;  %v3692_v63 = vld [vmem:[%s4597_s5 + $0xf0] ss:$8 sps:$4 sm:$0xff]   ;;  %v3700_v1 = vld [vmem:[%s4597_s5 + $0xe4] ss:$8 sps:$4 sm:$0xff]  }
 0x1e1   : > { %v3701_v6 = vld [vmem:[%s4597_s5 + $0x118] ss:$8 sps:$4 sm:$0xff]  }
 0x1e2   : > { %v1147_v7 = vpack.c.bf16 %v1124_v5, %v1122_v4  ;;  %v3698_v4 = vld [vmem:[%s4597_s5 + $0xe0] ss:$8 sps:$4 sm:$0xff]   ;;  %v3706_v5 = vld [vmem:[%s4597_s5 + $0xd4] ss:$8 sps:$4 sm:$0xff]  }
 0x1e4   : > { %3143 = vmatprep.mubr.msk.bf16.mxu0 %vm1211_vm8, %v1147_v7  ;;  %3176 = vmatprep.mubr.msk.bf16.mxu1 %vm1211_vm8, %v1147_v7  ;;  %v3709_v7 = vld [vmem:[%s4597_s5 + $0x10c] ss:$8 sps:$4 sm:$0xff]  }
 0x1e5   : > { %1252 = vmatmul.mubr.bf16.vlgmr.msra.gmra.mxu0 %v1146_v8  ;;  %1381 = vmatmul.mubr.bf16.vlgmr.msra.gmra.mxu1 %v1146_v8  ;;  %v3704_v8 = vld [vmem:[%s4597_s5 + $0xd0] ss:$8 sps:$4 sm:$0xff]  }
 0x1e6   : > { %1599 = vmatpush1.bf16.msra.mxu1 %v1589_v9  ;;  %1493 = vmatpush1.bf16.msra.mxu0 %v1483_v11  ;;  %v3712_v9 = vld [vmem:[%s4597_s5 + $0xc4] ss:$8 sps:$4 sm:$0xff]  }
 0x1e7   : > { %1600 = vmatprep.subr.bf16.mxu1 %v3652_v10  ;;  %1494 = vmatprep.subr.bf16.mxu0 %v3660_v12  ;;  %v3707_v10 = vld [vmem:[%s4597_s5 + $0x108] ss:$8 sps:$4 sm:$0xff]  }
 0x1e8   : > { %1626 = vmatprep.mubr.bf16.mxu1 %v3804_v2  ;;  %1520 = vmatprep.mubr.bf16.mxu0 %v3804_v2 }
 0x1ea   : > { %1601 = vmatpush1.bf16.msra.mxu1 %v3650_v13  ;;  %1495 = vmatpush1.bf16.msra.mxu0 %v3658_v14  ;;  %v3710_v13 = vld [vmem:[%s4597_s5 + $0xc0] ss:$8 sps:$4 sm:$0xff]   ;;  %v3715_v14 = vld [vmem:[%s4597_s5 + $0xb4] ss:$8 sps:$4 sm:$0xff]  }
 0x1eb   : > { %1602 = vmatprep.subr.bf16.mxu1 %v3657_v15  ;;  %1496 = vmatprep.subr.bf16.mxu0 %v3666_v16  ;;  %v3276_v15 = vld [vmem:[%s4597_s5 + $0x1b0] sm:$0x33] }
 0x1ee   : > { %1603 = vmatpush1.bf16.msra.mxu1 %v3655_v18  ;;  %1497 = vmatpush1.bf16.msra.mxu0 %v3664_v19  ;;  %v3713_v18 = vld [vmem:[%s4597_s5 + $0xb0] ss:$8 sps:$4 sm:$0xff]   ;;  %v3288_v19 = vcombine.high %v3276_v15, %v3276_v15 }
 0x1ef   : > { %1604 = vmatprep.subr.bf16.mxu1 %v3663_v20  ;;  %1498 = vmatprep.subr.bf16.mxu0 %v3672_v24  ;;  %v3287_v20 = vcombine.low %v3276_v15, %v3276_v15  ;;  %v3718_v24 = vld [vmem:[%s4597_s5 + $0x1a0] ss:$8 sps:$4 sm:$0xff]  }
 0x1f2   : > { %1605 = vmatpush1.bf16.msra.mxu1 %v3661_v21  ;;  %1499 = vmatpush1.bf16.msra.mxu0 %v3670_v25  ;;  %v3723_v25 = vld [vmem:[%s4597_s5 + $0x194] ss:$8 sps:$4 sm:$0xff]  }
 0x1f3   : > { %1606 = vmatprep.subr.bf16.mxu1 %v3669_v22  ;;  %1500 = vmatprep.subr.bf16.mxu0 %v3678_v17  ;;  %v1960_v22 = vsel %vm1481_vm7, %v3287_v20, 0  ;;  %v3724_v17 = vld [vmem:[%s4597_s5 + $0x180] ss:$8 sps:$4 sm:$0xff]  }
 0x1f6   : > { %1607 = vmatpush1.bf16.msra.mxu1 %v3667_v23  ;;  %1501 = vmatpush1.bf16.msra.mxu0 %v3676_v29  ;;  %v3720_v23 = vld [vmem:[%s4597_s5 + $0x1a4] ss:$8 sps:$4 sm:$0xff]   ;;  %v3729_v29 = vld [vmem:[%s4597_s5 + $0x174] ss:$8 sps:$4 sm:$0xff]  }
 0x1f7   : > { %1608 = vmatprep.subr.bf16.mxu1 %v3675_v26  ;;  %1502 = vmatprep.subr.bf16.mxu0 %v3683_v32  ;;  %v3721_v26 = vld [vmem:[%s4597_s5 + $0x190] ss:$8 sps:$4 sm:$0xff]   ;;  %v3730_v32 = vld [vmem:[%s4597_s5 + $0x160] ss:$8 sps:$4 sm:$0xff]  }
 0x1fa   : > { %1609 = vmatpush1.bf16.msra.mxu1 %v3673_v28  ;;  %1503 = vmatpush1.bf16.msra.mxu0 %v3681_v33  ;;  %v3726_v28 = vld [vmem:[%s4597_s5 + $0x184] ss:$8 sps:$4 sm:$0xff]  }
 0x1fb   : > { %3264 = vmatprep.subr.msk.bf16.mxu1 %vm1481_vm7, %v3263_v31  ;;  %3239 = vmatprep.subr.msk.bf16.mxu0 %vm1481_vm7, %v3238_v35  ;;  %v3732_v31 = vld [vmem:[%s4597_s5 + $0x164] ss:$8 sps:$4 sm:$0xff]   ;;  %v3735_v35 = vld [vmem:[%s4600_s8 + $0x30] sm:$0xff]  }
 0x2a5   : > { %v1253_v36 = vpop.f32.mrf.mxu0  ;;  %v1382_v37 = vpop.f32.mrf.mxu1 }
 0x2a6   : > { %v1389_v44 = vmax.f32 %v1253_v36, %v1382_v37  ;;  %v3737_v36 = vld [vmem:[%s4600_s8 + $0x28] sm:$0xff]   ;;  %v3739_v37 = vld [vmem:[%s4600_s8 + $0x20] sm:$0xff]  }
 0x2a7   : > { %v1255_v38 = vpop.f32.mrf.mxu0  ;;  %v1384_v39 = vpop.f32.mrf.mxu1 }
 0x2a8   : > { %v3741_v38 = vld [vmem:[%s4600_s8 + $0x18] sm:$0xff]   ;;  %v3743_v39 = vld [vmem:[%s4600_s8 + $0x10] sm:$0xff]  }
 0x2a9   : > { %v1256_v41 = vpop.f32.mrf.mxu0  ;;  %v1385_v43 = vpop.f32.mrf.mxu1 }
 0x2aa   : > { %v1390_v45 = vmax.f32 %v1256_v41, %v1385_v43 }
 0x2ab   : > { %v1258_v46 = vpop.f32.mrf.mxu0  ;;  %v1387_v48 = vpop.f32.mrf.mxu1 }
 0x2ac   : > { %v4189_v49 = vpack.c.bf16 %v1390_v45, %v1389_v44 }
 0x2ae   : > { %v1418_v52 = vshll.u32 %v4189_v49, 16  ;;  %3215 = vmatmul.mubr.msk.bf16.vlgmr.msra.gmra.mxu1 %vm1477_vm9, %v4189_v49  ;;  %v1416_v55 = vshrl.u32 %v4189_v49, 16  ;;  %v1650_v21 = vrot.slane %v4189_v49, 1  ;;  %v1900_v33 = vrot.slane %v4189_v49, 2 }
 0x2af   : > { %1846 = vmatpush1.bf16.msra.mxu1 %v1836_v50  ;;  %1873 = vmatprep.mubr.bf16.mxu1 %v3804_v2 }
 0x2b0   : > { %1847 = vmatprep.subr.bf16.mxu1 %v3686_v51  ;;  %v1420_v56 = vrot.slane %v1418_v52, 1  ;;  %v1774_v11 = vrot.slane %v1416_v55, 1  ;;  %v1775_v12 = vrot.slane %v1418_v52, 2 }
 0x2b2   : > { %v1421_v58 = vor.u32 %v1420_v56, %v1416_v55  ;;  %v1776_v16 = vor.u32 %v1775_v12, %v1774_v11 }
 0x2b3   : > { %1848 = vmatpush1.bf16.msra.mxu1 %v3684_v54 }
 0x2b4   : > { %3201 = vmatmul.mubr.msk.bf16.vlgmr.msra.gmra.mxu0 %vm1477_vm9, %v1421_v58  ;;  %1849 = vmatprep.subr.bf16.mxu1 %v3691_v57 }
 0x2b5   : > { %1720 = vmatpush1.bf16.msra.mxu0 %v1710_v59  ;;  %1747 = vmatprep.mubr.bf16.mxu0 %v3804_v2 }
 0x2b6   : > { %1721 = vmatprep.subr.bf16.mxu0 %v3694_v60 }
 0x2b7   : > { %1850 = vmatpush1.bf16.msra.mxu1 %v3689_v61  ;;  %v2012_v61 = vld [vmem:[%s4598_s6] sm:$0x3] }
 0x2b8   : > { %1851 = vmatprep.subr.bf16.mxu1 %v3697_v62 }
 0x2b9   : > { %1722 = vmatpush1.bf16.msra.mxu0 %v3692_v63 }
 0x2ba   : > { %1723 = vmatprep.subr.bf16.mxu0 %v3700_v1 }
 0x2bb   : > { %1852 = vmatpush1.bf16.msra.mxu1 %v3695_v0 }
 0x2bc   : > { %1853 = vmatprep.subr.bf16.mxu1 %v3703_v3 }
 0x2bd   : > { %1724 = vmatpush1.bf16.msra.mxu0 %v3698_v4 }
 0x2be   : > { %1725 = vmatprep.subr.bf16.mxu0 %v3706_v5 }
 0x2bf   : > { %1854 = vmatpush1.bf16.msra.mxu1 %v3701_v6  ;;  %v2017_v6 = vrot.slane %v2012_v61, %v978_v42 }
 0x2c0   : > { %1855 = vmatprep.subr.bf16.mxu1 %v3709_v7 }
 0x2c1   : > { %1726 = vmatpush1.bf16.msra.mxu0 %v3704_v8 }
 0x2c2   : > { %1727 = vmatprep.subr.bf16.mxu0 %v3712_v9 }
 0x2c3   : > { %1856 = vmatpush1.bf16.msra.mxu1 %v3707_v10  ;;  %v2021_v10 = vrot.slane %v2012_v61, %v982_v47  ;;  %v2032_v47 = vld [vmem:[%s4599_s7] sm:$0x7]  ;;  %v3757_v61 = vld [vmem:[%s4601_s9 + $0x10] sm:$0xff]  }
 0x2c5   : > { %1728 = vmatpush1.bf16.msra.mxu0 %v3710_v13 }
 0x2c6   : > { %3265 = vmatmul.mubr.msk.bf16.vlgmr.msra.gmra.mxu1 %vm1477_vm9, %v1776_v16  ;;  %1729 = vmatprep.subr.bf16.mxu0 %v3715_v14 }
 0x2c7   : > { %2078 = vmatprep.mubr.bf16.mxu1 %v3804_v2 }
 0x2c9   : > { %1730 = vmatpush1.bf16.msra.mxu0 %v3713_v18 }
 0x2ca   : > { %3289 = vmatprep.subr.msk.bf16.mxu0 %vm1481_vm7, %v3288_v19 }
 0x2cc   : > { %3240 = vmatmul.mubr.msk.bf16.vlgmr.msra.gmra.mxu0 %vm1477_vm9, %v1650_v21 }
 0x2cd   : > { %1970 = vmatpush1.bf16.msra.mxu0 %v1960_v22  ;;  %1997 = vmatprep.mubr.bf16.mxu0 %v3804_v2 }
 0x2ce   : > { %1971 = vmatprep.subr.bf16.mxu0 %v3720_v23 }
 0x2d1   : > { %1972 = vmatpush1.bf16.msra.mxu0 %v3718_v24 }
 0x2d2   : > { %1973 = vmatprep.subr.bf16.mxu0 %v3723_v25 }
 0x2d5   : > { %1974 = vmatpush1.bf16.msra.mxu0 %v3721_v26 }
 0x2d6   : > { %1975 = vmatprep.subr.bf16.mxu0 %v3726_v28 }
 0x2d9   : > { %1976 = vmatpush1.bf16.msra.mxu0 %v3724_v17  ;;  %v3293_v17 = vld [vmem:[%s4599_s7 + $0x4] sm:$0x7] }
 0x2da   : > { %1977 = vmatprep.subr.bf16.mxu0 %v3729_v29  ;;  %v3734_v29 = vld [vmem:[%s4600_s8 + $0x88] sm:$0xff]  }
 0x2dd   : > { %1978 = vmatpush1.bf16.msra.mxu0 %v3727_v30  ;;  %v3736_v30 = vld [vmem:[%s4600_s8 + $0x80] sm:$0xff]  }
 0x2de   : > { %1979 = vmatprep.subr.bf16.mxu0 %v3732_v31  ;;  %v3738_v31 = vld [vmem:[%s4600_s8 + $0x78] sm:$0xff]  }
 0x2e1   : > { %1980 = vmatpush1.bf16.msra.mxu0 %v3730_v32  ;;  %v3740_v32 = vld [vmem:[%s4600_s8 + $0x70] sm:$0xff]  }
 0x2e2   : > { %2220 = vmatprep.subr.bf16.mxu0 %v3804_v2 }
 0x2e4   : > { %3290 = vmatmul.mubr.msk.bf16.vlgmr.msra.gmra.mxu0 %vm1477_vm9, %v1900_v33  ;;  %v3742_v33 = vld [vmem:[%s4600_s8 + $0x68] sm:$0xff]  }
 0x2e5   : > { %2221 = vmatpush1.bf16.msra.mxu0 %v3733_v34  ;;  %v3744_v34 = vld [vmem:[%s4600_s8 + $0x60] sm:$0xff]  }
 0x2e6   : > { %2222 = vmatprep.subr.bf16.mxu0 %v3804_v2 }
 0x2e9   : > { %2223 = vmatpush1.bf16.msra.mxu0 %v3735_v35  ;;  %v3745_v35 = vld [vmem:[%s4600_s8 + $0x8] sm:$0xff]  }
 0x2ea   : > { %2224 = vmatprep.subr.bf16.mxu0 %v3804_v2 }
 0x2ed   : > { %2225 = vmatpush1.bf16.msra.mxu0 %v3737_v36  ;;  %v3746_v36 = vld [vmem:[%s4600_s8 + $0x58] sm:$0xff]  }
 0x2ee   : > { %2226 = vmatprep.subr.bf16.mxu0 %v3804_v2 }
 0x2f1   : > { %2227 = vmatpush1.bf16.msra.mxu0 %v3739_v37  ;;  %v3747_v37 = vld [vmem:[%s4600_s8] sm:$0xff]  }
 0x2f2   : > { %2228 = vmatprep.subr.bf16.mxu0 %v3804_v2 }
 0x2f5   : > { %2229 = vmatpush1.bf16.msra.mxu0 %v3741_v38  ;;  %v3748_v38 = vld [vmem:[%s4600_s8 + $0x50] sm:$0xff]  }
 0x2f6   : > { %2230 = vmatprep.subr.bf16.mxu0 %v3804_v2 }
 0x2f9   : > { %2231 = vmatpush1.bf16.msra.mxu0 %v3743_v39  ;;  %v3749_v39 = vld [vmem:[%s4600_s8 + $0x48] sm:$0xff]  }
 0x2fa   : > { %2232 = vmatprep.subr.bf16.mxu0 %v3804_v2 }
 0x2fd   : > { %2233 = vmatpush1.bf16.msra.mxu0 %v3745_v35  ;;  %v3781_v35 = vld [vmem:[%s4603_s11 + $0x20] sm:$0xff]  }
 0x2fe   : > { %2234 = vmatprep.subr.bf16.mxu0 %v3804_v2 }
 0x301   : > { %2235 = vmatpush1.bf16.msra.mxu0 %v3747_v37  ;;  %v3783_v37 = vld [vmem:[%s4603_s11 + $0x10] sm:$0xff]  }
 0x302   : > { %2248 = vmatprep.subr.bf16.mxu0 %v3804_v2 }
 0x305   : > { %2249 = vmatpush2.bf16.msra.mxu0 %v3749_v39  ;;  %v3785_v39 = vld [vmem:[%s4603_s11] sm:$0xff]  }
 0x306   : > { %2250 = vmatprep.subr.bf16.mxu0 %v3804_v2 }
 0x36e   : > { %v1628_v43 = vpop.f32.mrf.mxu1 }
 0x370   : > { %v1630_v45 = vpop.f32.mrf.mxu1 }
 0x372   : > { %v1632_v48 = vpop.f32.mrf.mxu1 }
 0x374   : > { %v1522_v40 = vpop.f32.mrf.mxu0  ;;  %v1634_v50 = vpop.f32.mrf.mxu1 }
 0x375   : > { %v1629_v53 = vadd.f32 %v1628_v43, %v1522_v40  ;;  %v3750_v40 = vld [vmem:[%s4600_s8 + $0x98] sm:$0xff]   ;;  %v3752_v43 = vld [vmem:[%s4600_s8 + $0x90] sm:$0xff]  }
 0x376   : > { %v1524_v41 = vpop.f32.mrf.mxu0 }
 0x377   : > { %v1631_v55 = vadd.f32 %v1630_v45, %v1524_v41  ;;  %v3751_v41 = vld [vmem:[%s4600_s8 + $0x40] sm:$0xff]  }
 0x378   : > { %v1526_v44 = vpop.f32.mrf.mxu0  ;;  %2251 = vmatpush2.bf16.msra.mxu0 %v3751_v41 }
 0x379   : > { %v1633_v58 = vadd.f32 %v1632_v48, %v1526_v44  ;;  %v3805_v44 = vmov 0.0  }
 0x37a   : > { %v1528_v46 = vpop.f32.mrf.mxu0  ;;  %3473 = vmatprep.subr.bf16.mxu0 %v3805_v44 }
 0x37b   : > { %v1635_v62 = vadd.f32 %v1634_v50, %v1528_v46 }
 0x386   : > { %v1875_v52 = vpop.f32.mrf.mxu1 }
 0x388   : > { %v1877_v57 = vpop.f32.mrf.mxu1 }
 0x38a   : > { %v1879_v0 = vpop.f32.mrf.mxu1 }
 0x38c   : > { %v1749_v49 = vpop.f32.mrf.mxu0  ;;  %v1881_v12 = vpop.f32.mrf.mxu1 }
 0x38d   : > { %v1758_v56 = vadd.f32 %v1749_v49, %v1629_v53 }
 0x38e   : > { %v1751_v51 = vpop.f32.mrf.mxu0 }
 0x38f   : > { %v1759_v59 = vadd.f32 %v1751_v51, %v1631_v55  ;;  %v1884_v1 = vadd.f32 %v1875_v52, %v1758_v56  ;;  %v3753_v55 = vld [vmem:[%s4601_s9 + $0x20] sm:$0xff]   ;;  %v3754_v56 = vld [vmem:[%s4601_s9 + $0x48] sm:$0xff]  }
 0x390   : > { %v1753_v54 = vpop.f32.mrf.mxu0 }
 0x391   : > { %v1760_v63 = vadd.f32 %v1753_v54, %v1633_v58  ;;  %v1885_v7 = vadd.f32 %v1877_v57, %v1759_v59  ;;  %v3755_v59 = vld [vmem:[%s4601_s9 + $0x18] sm:$0xff]  }
 0x392   : > { %v1755_v60 = vpop.f32.mrf.mxu0 }
 0x393   : > { %v1761_v4 = vadd.f32 %v1755_v60, %v1635_v62  ;;  %v1886_v11 = vadd.f32 %v1879_v0, %v1760_v63  ;;  %v3756_v60 = vld [vmem:[%s4601_s9 + $0x40] sm:$0xff]   ;;  %v3758_v62 = vld [vmem:[%s4601_s9 + $0x38] sm:$0xff]   ;;  %v3759_v63 = vld [vmem:[%s4601_s9 + $0x8] sm:$0xff]  }
 0x394   : > { %v3761_v0 = vld [vmem:[%s4601_s9] sm:$0xff]  }
 0x395   : > { %v1887_v16 = vadd.f32 %v1881_v12, %v1761_v4 }
 0x3a4   : > { %v1999_v3 = vpop.f32.mrf.mxu0 }
 0x3a5   : > { %v2008_v5 = vadd.f32 %v1999_v3, %v1884_v1  ;;  %v3760_v1 = vld [vmem:[%s4601_s9 + $0x30] sm:$0xff]   ;;  %v3762_v3 = vld [vmem:[%s4601_s9 + $0x28] sm:$0xff]  }
 0x3a6   : > { %v2001_v8 = vpop.f32.mrf.mxu0 }
 0x3a7   : > { %v2009_v9 = vadd.f32 %v2001_v8, %v1885_v7  ;;  %v2024_v14 = vadd.f32 %v2017_v6, %v2008_v5 }
 0x3a8   : > { %v2003_v13 = vpop.f32.mrf.mxu0 }
 0x3a9   : > { %v2010_v15 = vadd.f32 %v2003_v13, %v1886_v11  ;;  %v2025_v19 = vadd.f32 %v2021_v10, %v2009_v9  ;;  %v2028_v22 = vmax.f32 %v2024_v14, 0.0  ;;  %v3763_v9 = vld [vmem:[%s4601_s9 + $0x98] sm:$0xff]   ;;  %v3764_v13 = vld [vmem:[%s4601_s9 + $0x70] sm:$0xff]  }
 0x3aa   : > { %v2005_v18 = vpop.f32.mrf.mxu0 }
 0x3ab   : > { %v2026_v20 = vadd.f32 %v2017_v6, %v2010_v15  ;;  %v2011_v21 = vadd.f32 %v2005_v18, %v1887_v16  ;;  %v2029_v42 = vmax.f32 %v2025_v19, 0.0  ;;  %v3765_v18 = vld [vmem:[%s4601_s9 + $0x90] sm:$0xff]   ;;  %v3766_v19 = vld [vmem:[%s4601_s9 + $0x68] sm:$0xff]  }
 0x3ad   : > { %v2030_v23 = vmax.f32 %v2026_v20, 0.0  ;;  %v2027_v24 = vadd.f32 %v2021_v10, %v2011_v21  ;;  %v3767_v20 = vld [vmem:[%s4601_s9 + $0x88] sm:$0xff]   ;;  %v3768_v21 = vld [vmem:[%s4601_s9 + $0x60] sm:$0xff]  }
 0x3af   : > { %v2033_v25 = vpack.c.bf16 %v2030_v23, %v2028_v22  ;;  %v2031_v26 = vmax.f32 %v2027_v24, 0.0  ;;  %v3769_v22 = vld [vmem:[%s4601_s9 + $0x80] sm:$0xff]   ;;  %v3770_v23 = vld [vmem:[%s4601_s9 + $0x58] sm:$0xff]  }
 0x3b0   : > { %v3771_v24 = vld [vmem:[%s4601_s9 + $0x78] sm:$0xff]  }
 0x3b1   : > { %v2034_v28 = vpack.c.bf16 %v2031_v26, %v2029_v42  ;;  %v2041_v27 = vsel %vm2039_vm10, %v2033_v25, 0  ;;  %v3772_v42 = vld [vmem:[%s4601_s9 + $0x50] sm:$0xff]   ;;  %v3773_v26 = vld [vmem:[%s4601_s9 + $0xc0] sm:$0xff]  }
 0x3b3   : > { %3291 = vmatprep.subr.msk.bf16.mxu1 %vm2039_vm10, %v2034_v28 }
 0x3b4   : > { %2061 = vmatpush1.bf16.msra.mxu1 %v2041_v27 }
 0x3b5   : > { %3294 = vmatprep.subr.msk.bf16.mxu1 %vm2039_vm10, %v2034_v28 }
 0x3b7   : > { %3292 = vmatmul.mubr.msk.bf16.vlgmr.msra.gmra.mxu1 %vm2035_vm11, %v2032_v47  ;;  %v3775_v47 = vld [vmem:[%s4601_s9 + $0xb0] sm:$0xff]  }
 0x3b8   : > { %2107 = vmatpush1.bf16.msra.mxu1 %v2041_v27  ;;  %2124 = vmatprep.mubr.bf16.mxu1 %v3804_v2  ;;  %v3774_v27 = vld [vmem:[%s4601_s9 + $0xb8] sm:$0xff]  }
 0x3b9   : > { %2341 = vmatprep.subr.bf16.mxu1 %v3804_v2 }
 0x3bf   : > { %3295 = vmatmul.mubr.msk.bf16.vlgmr.msra.gmra.mxu1 %vm2035_vm11, %v3293_v17  ;;  %v3776_v17 = vld [vmem:[%s4601_s9 + $0xa8] sm:$0xff]  }
 0x3c0   : > { %2342 = vmatpush1.bf16.msra.mxu1 %v3734_v29  ;;  %v3777_v29 = vld [vmem:[%s4601_s9 + $0xa0] sm:$0xff]  }
 0x3c1   : > { %2343 = vmatprep.subr.bf16.mxu1 %v3804_v2 }
 0x3c4   : > { %2344 = vmatpush1.bf16.msra.mxu1 %v3736_v30 }
 0x3c5   : > { %2345 = vmatprep.subr.bf16.mxu1 %v3804_v2 }
 0x3c8   : > { %2346 = vmatpush1.bf16.msra.mxu1 %v3738_v31  ;;  %v3778_v31 = vld [vmem:[%s4603_s11 + $0x38] ss:$0 sps:$4 sm:$0xff]  }
 0x3c9   : > { %2347 = vmatprep.subr.bf16.mxu1 %v3804_v2 }
 0x3cc   : > { %2348 = vmatpush1.bf16.msra.mxu1 %v3740_v32  ;;  %v2882_v32 = vsel %vm1215_vm6, %v3778_v31, 0 }
 0x3cd   : > { %2349 = vmatprep.subr.bf16.mxu1 %v3804_v2 }
 0x3d0   : > { %2350 = vmatpush1.bf16.msra.mxu1 %v3742_v33  ;;  %v3779_v33 = vld [vmem:[%s4603_s11 + $0x30] sm:$0xff]  }
 0x3d1   : > { %2351 = vmatprep.subr.bf16.mxu1 %v3804_v2 }
 0x3d4   : > { %2352 = vmatpush1.bf16.msra.mxu1 %v3744_v34  ;;  %v3780_v34 = vld [vmem:[%s4603_s11 + $0x28] sm:$0xff]  }
 0x3d5   : > { %2353 = vmatprep.subr.bf16.mxu1 %v3804_v2 }
 0x3d8   : > { %2354 = vmatpush1.bf16.msra.mxu1 %v3746_v36  ;;  %v3782_v36 = vld [vmem:[%s4603_s11 + $0x18] sm:$0xff]  }
 0x3d9   : > { %2355 = vmatprep.subr.bf16.mxu1 %v3804_v2 }
 0x3dc   : > { %2356 = vmatpush1.bf16.msra.mxu1 %v3748_v38  ;;  %v3784_v38 = vld [vmem:[%s4603_s11 + $0x8] sm:$0xff]  }
 0x3dd   : > { %2369 = vmatprep.subr.bf16.mxu1 %v3804_v2 }
 0x3e0   : > { %2370 = vmatpush2.bf16.msra.mxu1 %v3750_v40  ;;  %v3786_v40 = vld [vmem:[%s4605_s13 + $0x28] ss:$0 sps:$4 sm:$0x33]  }
 0x3e1   : > { %2371 = vmatprep.subr.bf16.mxu1 %v3804_v2  ;;  %v2975_v41 = vsel %vm1481_vm7, %v3786_v40, 0 }
 0x3e4   : > { %2372 = vmatpush2.bf16.msra.mxu1 %v3752_v43  ;;  %v3787_v43 = vld [vmem:[%s4605_s13 + $0x20] sm:$0xff]  }
 0x3e5   : > { %3487 = vmatprep.subr.bf16.mxu1 %v3805_v44 }
 0x477   : > { %v2080_v45 = vpop.f32.mrf.mxu1 }
 0x479   : > { %v2082_v46 = vpop.f32.mrf.mxu1 }
 0x47b   : > { %v2084_v48 = vpop.f32.mrf.mxu1 }
 0x47d   : > { %v2085_v49 = vpop.f32.mrf.mxu1 }
 0x47f   : > { %v2126_v2 = vpop.f32.mrf.mxu1 }
 0x480   : > { %v2133_v50 = vmax.f32 %v2080_v45, %v2126_v2  ;;  %v3788_v45 = vld [vmem:[%s4605_s13 + $0x18] sm:$0xff]  }
 0x481   : > { %v2128_v51 = vpop.f32.mrf.mxu1 }
 0x482   : > { %v2134_v52 = vmax.f32 %v2082_v46, %v2128_v51  ;;  %v2155_v57 = vpack.c.bf16 %v2133_v50, %v2133_v50  ;;  %v3789_v46 = vld [vmem:[%s4605_s13 + $0x10] sm:$0xff]  }
 0x483   : > { %v2130_v53 = vpop.f32.mrf.mxu1 }
 0x484   : > { %v2156_v54 = vpack.c.bf16 %v2134_v52, %v2134_v52 }
 0x485   : > { %v2131_v58 = vpop.f32.mrf.mxu1 }
 0x486   : > { %3306 = vmatprep.mubr.msk.bf16.mxu0 %vm543_vm0, %v2156_v54  ;;  %3337 = vmatprep.mubr.msk.bf16.mxu1 %vm543_vm0, %v2156_v54 }
 0x487   : > { %2253 = vmatmul.mubr.bf16.vlgmr.msra.gmra.mxu0 %v2155_v57  ;;  %2374 = vmatmul.mubr.bf16.vlgmr.msra.gmra.mxu1 %v2155_v57 }
 0x488   : > { %3488 = vmatpush3.bf16.msra.mxu1 %v3753_v55  ;;  %3474 = vmatpush3.bf16.msra.mxu0 %v3754_v56 }
 0x489   : > { %3489 = vmatprep.subr.bf16.mxu1 %v3805_v44  ;;  %3475 = vmatprep.subr.bf16.mxu0 %v3805_v44 }
 0x48a   : > { %3497 = vmatprep.mubr.msk.bf16.mxu1 %vm3806_vm12, %v3805_v44  ;;  %3483 = vmatprep.mubr.msk.bf16.mxu0 %vm3806_vm12, %v3805_v44 }
 0x48c   : > { %3490 = vmatpush3.bf16.msra.mxu1 %v3755_v59  ;;  %3476 = vmatpush3.bf16.msra.mxu0 %v3756_v60 }
 0x48d   : > { %3491 = vmatprep.subr.bf16.mxu1 %v3805_v44  ;;  %3477 = vmatprep.subr.bf16.mxu0 %v3805_v44 }
 0x490   : > { %3492 = vmatpush3.bf16.msra.mxu1 %v3757_v61  ;;  %3478 = vmatpush3.bf16.msra.mxu0 %v3758_v62 }
 0x491   : > { %3493 = vmatprep.subr.bf16.mxu1 %v3805_v44  ;;  %3479 = vmatprep.subr.bf16.mxu0 %v3805_v44 }
 0x494   : > { %3494 = vmatpush3.bf16.msra.mxu1 %v3759_v63  ;;  %3480 = vmatpush3.bf16.msra.mxu0 %v3760_v1 }
 0x495   : > { %3495 = vmatprep.subr.bf16.mxu1 %v3805_v44  ;;  %3481 = vmatprep.subr.bf16.mxu0 %v3805_v44 }
 0x498   : > { %3496 = vmatpush3.bf16.msra.mxu1 %v3761_v0  ;;  %3482 = vmatpush3.bf16.msra.mxu0 %v3762_v3 }
 0x499   : > { %3515 = vmatprep.subr.bf16.mxu1 %v3805_v44  ;;  %3501 = vmatprep.subr.bf16.mxu0 %v3805_v44 }
 0x547   : > { %v2254_v4 = vpop.f32.mrf.mxu0  ;;  %v2375_v5 = vpop.f32.mrf.mxu1 }
 0x548   : > { %v2381_v6 = vmax.f32 %v2254_v4, %v2375_v5  ;;  %v2812_v4 = vld [vmem:[%s4602_s10] sm:$0x1] }
 0x549   : > { %v2256_v7 = vpop.f32.mrf.mxu0  ;;  %v2377_v8 = vpop.f32.mrf.mxu1 }
 0x54a   : > { %v2392_v10 = vpack.c.bf16 %v2381_v6, %v2381_v6 }
 0x54b   : > { %v2257_v11 = vpop.f32.mrf.mxu0  ;;  %v2378_v12 = vpop.f32.mrf.mxu1 }
 0x54c   : > { %v2405_v14 = vshrl.u32 %v2392_v10, 16  ;;  %3498 = vmatmul.mubr.msk.bf16.vlgmr.msra.gmra.mxu1 %vm2437_vm13, %v2392_v10  ;;  %v2565_v28 = vrot.slane %v2392_v10, 1  ;;  %v2737_v30 = vrot.slane %v2392_v10, 2  ;;  %v3790_v12 = vld [vmem:[%s4605_s13 + $0x8] sm:$0xff]  }
 0x54d   : > { %3516 = vmatpush3.bf16.msra.mxu1 %v3763_v9  ;;  %v2258_v15 = vpop.f32.mrf.mxu0  ;;  %v2379_v16 = vpop.f32.mrf.mxu1  ;;  %3525 = vmatprep.mubr.msk.bf16.mxu1 %vm3806_vm12, %v3805_v44 }
 0x54e   : > { %3484 = vmatmul.mubr.msk.bf16.vlgmr.msra.gmra.mxu0 %vm2437_vm13, %v2405_v14  ;;  %3517 = vmatprep.subr.bf16.mxu1 %v3805_v44  ;;  %v2651_v25 = vrot.slane %v2405_v14, 1  ;;  %v2831_v14 = vld [vmem:[%s4604_s12] sm:$0x1] }
 0x54f   : > { %3502 = vmatpush3.bf16.msra.mxu0 %v3764_v13  ;;  %3511 = vmatprep.mubr.msk.bf16.mxu0 %vm3806_vm12, %v3805_v44  ;;  %v3791_v13 = vld [vmem:[%s4605_s13] sm:$0xff]  }
 0x550   : > { %3503 = vmatprep.subr.bf16.mxu0 %v3805_v44 }
 0x551   : > { %3518 = vmatpush3.bf16.msra.mxu1 %v3765_v18 }
 0x552   : > { %3519 = vmatprep.subr.bf16.mxu1 %v3805_v44 }
 0x553   : > { %3504 = vmatpush3.bf16.msra.mxu0 %v3766_v19 }
 0x554   : > { %3505 = vmatprep.subr.bf16.mxu0 %v3805_v44 }
 0x555   : > { %3520 = vmatpush3.bf16.msra.mxu1 %v3767_v20 }
 0x556   : > { %3521 = vmatprep.subr.bf16.mxu1 %v3805_v44 }
 0x557   : > { %3506 = vmatpush3.bf16.msra.mxu0 %v3768_v21 }
 0x558   : > { %3507 = vmatprep.subr.bf16.mxu0 %v3805_v44 }
 0x559   : > { %3522 = vmatpush3.bf16.msra.mxu1 %v3769_v22 }
 0x55a   : > { %3523 = vmatprep.subr.bf16.mxu1 %v3805_v44 }
 0x55b   : > { %3508 = vmatpush3.bf16.msra.mxu0 %v3770_v23 }
 0x55c   : > { %3509 = vmatprep.subr.bf16.mxu0 %v3805_v44 }
 0x55d   : > { %3524 = vmatpush3.bf16.msra.mxu1 %v3771_v24 }
 0x55e   : > { %3543 = vmatprep.subr.bf16.mxu1 %v3805_v44 }
 0x55f   : > { %3510 = vmatpush3.bf16.msra.mxu0 %v3772_v42 }
 0x560   : > { %3526 = vmatmul.mubr.msk.bf16.vlgmr.msra.gmra.mxu1 %vm2437_vm13, %v2651_v25  ;;  %3529 = vmatprep.subr.bf16.mxu0 %v3805_v44 }
 0x561   : > { %3559 = vmatprep.mubr.msk.bf16.mxu1 %vm3806_vm12, %v3805_v44  ;;  %3544 = vmatpush3.bf16.msra.mxu1 %v2882_v32 }
 0x562   : > { %3512 = vmatmul.mubr.msk.bf16.vlgmr.msra.gmra.mxu0 %vm2437_vm13, %v2565_v28  ;;  %3545 = vmatprep.subr.bf16.mxu1 %v3805_v44 }
 0x563   : > { %3530 = vmatpush3.bf16.msra.mxu0 %v3773_v26  ;;  %3539 = vmatprep.mubr.msk.bf16.mxu0 %vm3806_vm12, %v3805_v44 }
 0x564   : > { %3531 = vmatprep.subr.bf16.mxu0 %v3805_v44 }
 0x565   : > { %3546 = vmatpush3.bf16.msra.mxu1 %v3779_v33 }
 0x566   : > { %3547 = vmatprep.subr.bf16.mxu1 %v3805_v44 }
 0x567   : > { %3532 = vmatpush3.bf16.msra.mxu0 %v3774_v27 }
 0x568   : > { %3533 = vmatprep.subr.bf16.mxu0 %v3805_v44 }
 0x569   : > { %3548 = vmatpush3.bf16.msra.mxu1 %v3780_v34 }
 0x56a   : > { %3549 = vmatprep.subr.bf16.mxu1 %v3805_v44 }
 0x56b   : > { %3534 = vmatpush3.bf16.msra.mxu0 %v3775_v47 }
 0x56c   : > { %3535 = vmatprep.subr.bf16.mxu0 %v3805_v44 }
 0x56d   : > { %3550 = vmatpush3.bf16.msra.mxu1 %v3781_v35 }
 0x56e   : > { %3551 = vmatprep.subr.bf16.mxu1 %v3805_v44 }
 0x56f   : > { %3536 = vmatpush3.bf16.msra.mxu0 %v3776_v17 }
 0x570   : > { %3537 = vmatprep.subr.bf16.mxu0 %v3805_v44 }
 0x571   : > { %3552 = vmatpush3.bf16.msra.mxu1 %v3782_v36 }
 0x572   : > { %3553 = vmatprep.subr.bf16.mxu1 %v3805_v44 }
 0x573   : > { %3538 = vmatpush3.bf16.msra.mxu0 %v3777_v29 }
 0x574   : > { %3563 = vmatprep.subr.bf16.mxu0 %v3805_v44 }
 0x575   : > { %3554 = vmatpush3.bf16.msra.mxu1 %v3783_v37 }
 0x576   : > { %3540 = vmatmul.mubr.msk.bf16.vlgmr.msra.gmra.mxu0 %vm2437_vm13, %v2737_v30  ;;  %3555 = vmatprep.subr.bf16.mxu1 %v3805_v44 }
 0x577   : > { %3575 = vmatprep.mubr.msk.bf16.mxu0 %vm3806_vm12, %v3805_v44  ;;  %3564 = vmatpush3.bf16.msra.mxu0 %v2975_v41 }
 0x578   : > { %3565 = vmatprep.subr.bf16.mxu0 %v3805_v44 }
 0x579   : > { %3556 = vmatpush3.bf16.msra.mxu1 %v3784_v38 }
 0x57a   : > { %3557 = vmatprep.subr.bf16.mxu1 %v3805_v44 }
 0x57b   : > { %3566 = vmatpush3.bf16.msra.mxu0 %v3787_v43 }
 0x57c   : > { %3567 = vmatprep.subr.bf16.mxu0 %v3805_v44 }
 0x57d   : > { %3558 = vmatpush3.bf16.msra.mxu1 %v3785_v39 }
 0x57f   : > { %3568 = vmatpush3.bf16.msra.mxu0 %v3788_v45 }
 0x580   : > { %3569 = vmatprep.subr.bf16.mxu0 %v3805_v44 }
 0x583   : > { %3570 = vmatpush3.bf16.msra.mxu0 %v3789_v46 }
 0x584   : > { %3571 = vmatprep.subr.bf16.mxu0 %v3805_v44 }
 0x587   : > { %3572 = vmatpush3.bf16.msra.mxu0 %v3790_v12 }
 0x588   : > { %3573 = vmatprep.subr.bf16.mxu0 %v3805_v44  ;;  %v2937_v44 = vld [vmem:[%s4606_s14] sm:$0x1] }
 0x58b   : > { %3574 = vmatpush3.bf16.msra.mxu0 %v3791_v13 }
 0x60c   : > { %v2547_v48 = vpop.f32.mrf.mxu1 }
 0x60e   : > { %v2475_v49 = vpop.f32.mrf.mxu0  ;;  %v3499_v2 = vpop.f32.mrf.mxu1 }
 0x60f   : > { %v2548_v63 = vadd.f32 %v2547_v48, %v2475_v49 }
 0x610   : > { %v3485_v50 = vpop.f32.mrf.mxu0  ;;  %v2550_v51 = vpop.f32.mrf.mxu1 }
 0x612   : > { %v2478_v52 = vpop.f32.mrf.mxu0  ;;  %v3500_v53 = vpop.f32.mrf.mxu1 }
 0x614   : > { %v3486_v54 = vpop.f32.mrf.mxu0 }
 0x620   : > { %v2719_v55 = vpop.f32.mrf.mxu1 }
 0x622   : > { %v2633_v56 = vpop.f32.mrf.mxu0  ;;  %v3527_v57 = vpop.f32.mrf.mxu1 }
 0x623   : > { %v2639_v1 = vadd.f32 %v2633_v56, %v2548_v63 }
 0x624   : > { %v3513_v58 = vpop.f32.mrf.mxu0  ;;  %v2722_v59 = vpop.f32.mrf.mxu1 }
 0x625   : > { %v2725_v0 = vadd.f32 %v2719_v55, %v2639_v1 }
 0x626   : > { %v2636_v60 = vpop.f32.mrf.mxu0  ;;  %v3528_v61 = vpop.f32.mrf.mxu1 }
 0x628   : > { %v3514_v62 = vpop.f32.mrf.mxu0 }
 0x636   : > { %v2805_v3 = vpop.f32.mrf.mxu0 }
 0x637   : > { %v2811_v5 = vadd.f32 %v2805_v3, %v2725_v0 }
 0x638   : > { %v3541_v6 = vpop.f32.mrf.mxu0 }
 0x639   : > { %v2813_v7 = vadd.f32 %v2812_v4, %v2811_v5 }
 0x63a   : > { %v2808_v8 = vpop.f32.mrf.mxu0 }
 0x63b   : > { %v2814_v9 = vmax.f32 %v2813_v7, 0.0 }
 0x63c   : > { %v3542_v10 = vpop.f32.mrf.mxu0 }
 0x63d   : > { %v2830_v11 = vpack.c.bf16 %v2814_v9, %v2814_v9 }
 0x63f   : > { %3560 = vmatmul.mubr.msk.bf16.vlgmr.msra.gmra.mxu1 %vm2877_vm14, %v2830_v11 }
 0x6ff   : > { %v2918_v15 = vpop.f32.mrf.mxu1 }
 0x700   : > { %v2919_v16 = vadd.f32 %v2918_v15, %v2831_v14 }
 0x701   : > { %v3561_v18 = vpop.f32.mrf.mxu1 }
 0x702   : > { %v2924_v19 = vmax.f32 %v2919_v16, 0.0 }
 0x703   : > { %v2921_v20 = vpop.f32.mrf.mxu1 }
 0x704   : > { %v2936_v21 = vpack.c.bf16 %v2924_v19, %v2924_v19 }
 0x705   : > { %v3562_v22 = vpop.f32.mrf.mxu1 }
 0x706   : > { %3576 = vmatmul.mubr.msk.bf16.vlgmr.msra.gmra.mxu0 %vm1477_vm9, %v2936_v21 }
 0x7c6   : > { %v3011_v23 = vpop.f32.mrf.mxu0 }
 0x7c7   : > { %v3012_v24 = vadd.f32 %v3011_v23, %v2937_v44 }
 0x7c8   : > { %v3577_v42 = vpop.f32.mrf.mxu0 }
 0x7c9   : > { %v3017_v25 = vsub.f32 0.0, %v3012_v24 }
 0x7ca   : > { %v3014_v26 = vpop.f32.mrf.mxu0 }
 0x7cb   : > { %v3018_v28 = vmul.f32 1.442695, %v3017_v25 }
 0x7cc   : > { %v3578_v27 = vpop.f32.mrf.mxu0 }
 0x7cd   : > { %3792 = vpow2.f32 %v3018_v28 }
 0x7da   : > { %v3793_v47 = vpop.eup %3792 }
 0x7db   : > { %v3020_v17 = vadd.f32 1.0, %v3793_v47 }
 0x7dd   : > { %3794 = vrcp.f32 %v3020_v17 }
 0x7ea   : > { %v3795_v29 = vpop.eup %3794 }
 0x7eb   : > { %3023 = vst [vmem:[%s490_s16] sm:$0x1] %v3795_v29 }
 0x7ec PF: > { %s25_s18 = sadd.s32 1, %s3802_s18  }
 0x7ed   : > { %p22_p4 = scmp.ge.s32.totalorder %s25_s18, 4  }
 0x7ef   :  { %24 = sbr.rel (!%p22_p4) target bundleno = 1 (0x1), region = 126 }

</bundles_post_ra>
